<compile_context>
chip_gen: v6e
topology: v6e:2x2x1
jax: 0.10.0
libtpu: 0.0.40
codegen_flags: <defaults>
</compile_context>

<pallas_src>
import jax
import jax.numpy as jnp
from jax import lax
from jax.experimental import pallas as pl
from jax.experimental.pallas import tpu as pltpu


def _round_up(n, m):
    return ((n + m - 1) // m) * m


def _offer_expert_kernel(x1_ref, x2_ref, w1_ref, b1_ref, w2_ref, b2_ref, out_ref):
    """One batch tile: both towers + cosine similarity."""
    w1 = w1_ref[...]          # (D, 256) bf16, VMEM-resident
    b1 = b1_ref[...]          # (1, 256) f32
    w2 = w2_ref[...]          # (256, 512) bf16 (BN folded), VMEM-resident
    b2 = b2_ref[...]          # (1, 512) f32 (BN folded)

    def tower(x_ref):
        # f32 HBM tile -> bf16 MXU operand, cast in-kernel (no wrapper pass).
        x = x_ref[...].astype(jnp.bfloat16)                               # (tb, D)
        h = jnp.dot(x, w1, preferred_element_type=jnp.float32)            # (tb, 256)
        h = jnp.maximum(h + b1, 0.0)
        # BatchNorm(eval) + Dropout(identity) were folded into w2/b2.
        o = jnp.dot(h.astype(jnp.bfloat16), w2,
                    preferred_element_type=jnp.float32)                   # (tb, 512)
        return o + b2

    o1 = tower(x1_ref)
    o2 = tower(x2_ref)

    # Cosine similarity without materializing normalized vectors:
    #   dot / (max(||o1||, 1e-12) * max(||o2||, 1e-12))
    dot = jnp.sum(o1 * o2, axis=1)
    n1 = jnp.sum(o1 * o1, axis=1)
    n2 = jnp.sum(o2 * o2, axis=1)
    inv = lax.rsqrt(jnp.maximum(n1, 1e-24)) * lax.rsqrt(jnp.maximum(n2, 1e-24))
    out_ref[...] = (dot * inv).reshape(out_ref.shape)


def offer_expert_forward(x1, x2, params, *, block_batch=512):
    """Folds BN into Linear2, tiles the batch, launches the Pallas kernel."""
    w1, b1 = params["w1"], params["b1"]
    gamma, beta = params["bn_gamma"], params["bn_beta"]
    run_mean, run_var = params["bn_mean"], params["bn_var"]
    w2, b2 = params["w2"], params["b2"]

    eps = 1e-5
    bn_scale = gamma / jnp.sqrt(run_var + eps)           # (256,)
    bn_shift = beta - run_mean * bn_scale                # (256,)
    # Fold eval-mode BN affine (and identity Dropout) into Linear2 — exact in f32.
    w2_folded = bn_scale[:, None] * w2                   # (256, 512)
    b2_folded = b2 + bn_shift @ w2                       # (512,)

    B, D = x1.shape
    H1 = w1.shape[1]
    H2 = w2.shape[1]

    # Tile choice:
    #  * large batches: tb multiple of 128 (lane-dense, unmasked vst output),
    #    capped at round_up(B/2, 128) so there are >= 2 tiles for v7x's 2 TCs.
    #  * tiny batches: one sublane-aligned tile (perf irrelevant there).
    if B >= 256:
        tb = max(128, min(_round_up(block_batch, 128),
                          _round_up(pl.cdiv(B, 2), 128)))
    else:
        tb = _round_up(max(B, 8), 8)
    num_tiles = pl.cdiv(B, tb)

    # Only pad when the batch is smaller than a single tile (tiny batches).
    # Otherwise the ragged last block is handled by Pallas; rows are
    # independent, so garbage rows are discarded by the [:B] slice below.
    if B < tb:
        pad = ((0, tb - B), (0, 0))
        x1 = jnp.pad(x1, pad)
        x2 = jnp.pad(x2, pad)

    # Weights/biases: tiny one-time casts; kept VMEM-resident via constant maps.
    w1_bf = w1.astype(jnp.bfloat16)
    w2_bf = w2_folded.astype(jnp.bfloat16)
    b1_2d = b1.reshape(1, H1).astype(jnp.float32)
    b2_2d = b2_folded.reshape(1, H2).astype(jnp.float32)

    x_spec = pl.BlockSpec((tb, D), lambda i: (i, 0))
    const = lambda shape: pl.BlockSpec(shape, lambda i, _n=len(shape): (0,) * _n)

    out = pl.pallas_call(
        _offer_expert_kernel,
        out_shape=jax.ShapeDtypeStruct((num_tiles, 1, tb), jnp.float32),
        grid=(num_tiles,),
        in_specs=[
            x_spec,                 # x1 tile (f32, cast to bf16 in kernel)
            x_spec,                 # x2 tile
            const((D, H1)),         # w1 (resident)
            const((1, H1)),         # b1 (resident)
            const((H1, H2)),        # w2 with BN folded (resident)
            const((1, H2)),         # b2 with BN folded (resident)
        ],
        out_specs=pl.BlockSpec((1, 1, tb), lambda i: (i, 0, 0)),
        compiler_params=pltpu.CompilerParams(
            dimension_semantics=("parallel",),
        ),
    )(x1, x2, w1_bf, b1_2d, w2_bf, b2_2d)

    return out.reshape(num_tiles * tb, 1)[:B]


def init_params(key, vector_size=384):
    """Deterministic synthetic parameters matching the module's shapes."""
    k1, k2, k3, k4, k5, k6 = jax.random.split(key, 6)
    h1, h2 = 256, 512
    lim1 = 1.0 / jnp.sqrt(vector_size)
    lim2 = 1.0 / jnp.sqrt(h1)
    return {
        # stored as (in, out) -> kernel computes x @ W + b
        "w1": jax.random.uniform(k1, (vector_size, h1), jnp.float32, -lim1, lim1),
        "b1": jax.random.uniform(k2, (h1,), jnp.float32, -lim1, lim1),
        "bn_gamma": jnp.ones((h1,), jnp.float32),
        "bn_beta": jnp.zeros((h1,), jnp.float32),
        "bn_mean": 0.1 * jax.random.normal(k3, (h1,), jnp.float32),
        "bn_var": jnp.abs(jax.random.normal(k4, (h1,), jnp.float32)) + 0.5,
        "w2": jax.random.uniform(k5, (h1, h2), jnp.float32, -lim2, lim2),
        "b2": jax.random.uniform(k6, (h2,), jnp.float32, -lim2, lim2),
    }


def reference_forward(x1, x2, params):
    """Pure-JAX f32 reference (un-fused, un-quantized) for verification."""
    eps = 1e-5
    bn_scale = params["bn_gamma"] / jnp.sqrt(params["bn_var"] + eps)
    bn_shift = params["bn_beta"] - params["bn_mean"] * bn_scale

    def tower(x):
        h = jnp.maximum(x @ params["w1"] + params["b1"], 0.0)
        h = h * bn_scale + bn_shift
        return h @ params["w2"] + params["b2"]

    o1, o2 = tower(x1), tower(x2)
    n1 = o1 / jnp.maximum(jnp.linalg.norm(o1, axis=1, keepdims=True), 1e-12)
    n2 = o2 / jnp.maximum(jnp.linalg.norm(o2, axis=1, keepdims=True), 1e-12)
    return jnp.sum(n1 * n2, axis=1, keepdims=True)


if __name__ == "__main__":
    key = jax.random.PRNGKey(0)
    kx1, kx2, kx3, kx4, kp = jax.random.split(key, 5)

    D = 384
    params = init_params(kp, vector_size=D)

    # Case 1: tiny batch -> single sublane-aligned tile.
    B1 = 40
    a1 = jax.random.normal(kx1, (B1, D), jnp.float32)
    a2 = jax.random.normal(kx2, (B1, D), jnp.float32)
    sim1 = offer_expert_forward(a1, a2, params)
    jax.block_until_ready(sim1)
    ref1 = reference_forward(a1, a2, params)
    assert sim1.shape == (B1, 1), sim1.shape
    err1 = float(jnp.max(jnp.abs(sim1 - ref1)))
    assert err1 < 2.5e-2, err1

    # Case 2: multi-tile parallel grid with a ragged (partial) last block.
    B2 = 300
    c1 = jax.random.normal(kx3, (B2, D), jnp.float32)
    c2 = jax.random.normal(kx4, (B2, D), jnp.float32)
    sim2 = offer_expert_forward(c1, c2, params)
    jax.block_until_ready(sim2)
    ref2 = reference_forward(c1, c2, params)
    assert sim2.shape == (B2, 1), sim2.shape
    err2 = float(jnp.max(jnp.abs(sim2 - ref2)))
    assert err2 < 2.5e-2, err2

    print("KERNEL_OK")
</pallas_src>

<mosaic_0001>
module attributes {stable_mosaic.version = 11 : i64} {
  func.func @_offer_expert_kernel(%arg0: i32, %arg1: memref<40x384xf32, #tpu.memory_space<vmem>>, %arg2: memref<40x384xf32, #tpu.memory_space<vmem>>, %arg3: memref<384x256xbf16, #tpu.memory_space<vmem>>, %arg4: memref<1x256xf32, #tpu.memory_space<vmem>>, %arg5: memref<256x512xbf16, #tpu.memory_space<vmem>>, %arg6: memref<1x512xf32, #tpu.memory_space<vmem>>, %arg7: memref<1x1x40xf32, #tpu.memory_space<vmem>>) attributes {dimension_semantics = [#tpu.dimension_semantics<parallel>], iteration_bounds = array<i64: 1>, scalar_prefetch = 0 : i64, scratch_operands = 0 : i64, tpu.core_type = #tpu.core_type<tc>, window_params = [{transform_indices = @transform_0, window_bounds = array<i64: 40, 384>}, {transform_indices = @transform_1, window_bounds = array<i64: 40, 384>}, {pipeline_mode = #tpu.pipeline_mode<synchronous>, transform_indices = @transform_2, window_bounds = array<i64: 384, 256>}, {pipeline_mode = #tpu.pipeline_mode<synchronous>, transform_indices = @transform_3, window_bounds = array<i64: 1, 256>}, {pipeline_mode = #tpu.pipeline_mode<synchronous>, transform_indices = @transform_4, window_bounds = array<i64: 256, 512>}, {pipeline_mode = #tpu.pipeline_mode<synchronous>, transform_indices = @transform_5, window_bounds = array<i64: 1, 512>}, {transform_indices = @transform_6, window_bounds = array<i64: 1, 1, 40>}]} {
    %c0 = arith.constant 0 : index
    %c0_0 = arith.constant 0 : index
    %0 = vector.load %arg3[%c0, %c0_0] : memref<384x256xbf16, #tpu.memory_space<vmem>>, vector<384x256xbf16>
    %c0_1 = arith.constant 0 : index
    %c0_2 = arith.constant 0 : index
    %1 = vector.load %arg4[%c0_1, %c0_2] : memref<1x256xf32, #tpu.memory_space<vmem>>, vector<1x256xf32>
    %c0_3 = arith.constant 0 : index
    %c0_4 = arith.constant 0 : index
    %2 = vector.load %arg5[%c0_3, %c0_4] : memref<256x512xbf16, #tpu.memory_space<vmem>>, vector<256x512xbf16>
    %c0_5 = arith.constant 0 : index
    %c0_6 = arith.constant 0 : index
    %3 = vector.load %arg6[%c0_5, %c0_6] : memref<1x512xf32, #tpu.memory_space<vmem>>, vector<1x512xf32>
    %c0_7 = arith.constant 0 : index
    %c0_8 = arith.constant 0 : index
    %4 = vector.load %arg1[%c0_7, %c0_8] : memref<40x384xf32, #tpu.memory_space<vmem>>, vector<40x384xf32>
    %5 = arith.truncf %4 : vector<40x384xf32> to vector<40x384xbf16>
    %cst = arith.constant dense<0.000000e+00> : vector<40x256xf32>
    %6 = tpu.matmul %5, %0, %cst {dimension_numbers = #tpu.dot_dimension_numbers<[1], [0], [0], [1], [0, 0, 1, 1], [], []>} : vector<40x384xbf16>, vector<384x256xbf16>, vector<40x256xf32> -> vector<40x256xf32>
    %7 = vector.broadcast %1 : vector<1x256xf32> to vector<40x256xf32>
    %8 = arith.addf %6, %7 : vector<40x256xf32>
    %cst_9 = arith.constant 0.000000e+00 : f32
    %9 = vector.broadcast %cst_9 : f32 to vector<40x256xf32>
    %10 = arith.maximumf %8, %9 : vector<40x256xf32>
    %11 = arith.truncf %10 : vector<40x256xf32> to vector<40x256xbf16>
    %cst_10 = arith.constant dense<0.000000e+00> : vector<40x512xf32>
    %12 = tpu.matmul %11, %2, %cst_10 {dimension_numbers = #tpu.dot_dimension_numbers<[1], [0], [0], [1], [0, 0, 1, 1], [], []>} : vector<40x256xbf16>, vector<256x512xbf16>, vector<40x512xf32> -> vector<40x512xf32>
    %13 = vector.broadcast %3 : vector<1x512xf32> to vector<40x512xf32>
    %14 = arith.addf %12, %13 : vector<40x512xf32>
    %c0_11 = arith.constant 0 : index
    %c0_12 = arith.constant 0 : index
    %15 = vector.load %arg2[%c0_11, %c0_12] : memref<40x384xf32, #tpu.memory_space<vmem>>, vector<40x384xf32>
    %16 = arith.truncf %15 : vector<40x384xf32> to vector<40x384xbf16>
    %cst_13 = arith.constant dense<0.000000e+00> : vector<40x256xf32>
    %17 = tpu.matmul %16, %0, %cst_13 {dimension_numbers = #tpu.dot_dimension_numbers<[1], [0], [0], [1], [0, 0, 1, 1], [], []>} : vector<40x384xbf16>, vector<384x256xbf16>, vector<40x256xf32> -> vector<40x256xf32>
    %18 = vector.broadcast %1 : vector<1x256xf32> to vector<40x256xf32>
    %19 = arith.addf %17, %18 : vector<40x256xf32>
    %cst_14 = arith.constant 0.000000e+00 : f32
    %20 = vector.broadcast %cst_14 : f32 to vector<40x256xf32>
    %21 = arith.maximumf %19, %20 : vector<40x256xf32>
    %22 = arith.truncf %21 : vector<40x256xf32> to vector<40x256xbf16>
    %cst_15 = arith.constant dense<0.000000e+00> : vector<40x512xf32>
    %23 = tpu.matmul %22, %2, %cst_15 {dimension_numbers = #tpu.dot_dimension_numbers<[1], [0], [0], [1], [0, 0, 1, 1], [], []>} : vector<40x256xbf16>, vector<256x512xbf16>, vector<40x512xf32> -> vector<40x512xf32>
    %24 = vector.broadcast %3 : vector<1x512xf32> to vector<40x512xf32>
    %25 = arith.addf %23, %24 : vector<40x512xf32>
    %26 = arith.mulf %14, %25 : vector<40x512xf32>
    %cst_16 = arith.constant dense<0.000000e+00> : vector<40xf32>
    %27 = vector.multi_reduction <add>, %26, %cst_16 [1] : vector<40x512xf32> to vector<40xf32>
    %28 = arith.mulf %14, %14 : vector<40x512xf32>
    %cst_17 = arith.constant dense<0.000000e+00> : vector<40xf32>
    %29 = vector.multi_reduction <add>, %28, %cst_17 [1] : vector<40x512xf32> to vector<40xf32>
    %30 = arith.mulf %25, %25 : vector<40x512xf32>
    %cst_18 = arith.constant dense<0.000000e+00> : vector<40xf32>
    %31 = vector.multi_reduction <add>, %30, %cst_18 [1] : vector<40x512xf32> to vector<40xf32>
    %cst_19 = arith.constant 1.000000e-24 : f32
    %32 = vector.broadcast %cst_19 : f32 to vector<40xf32>
    %33 = arith.maximumf %29, %32 : vector<40xf32>
    %34 = math.rsqrt %33 : vector<40xf32>
    %cst_20 = arith.constant 1.000000e-24 : f32
    %35 = vector.broadcast %cst_20 : f32 to vector<40xf32>
    %36 = arith.maximumf %31, %35 : vector<40xf32>
    %37 = math.rsqrt %36 : vector<40xf32>
    %38 = arith.mulf %34, %37 : vector<40xf32>
    %39 = arith.mulf %27, %38 : vector<40xf32>
    %40 = vector.shape_cast %39 : vector<40xf32> to vector<1x1x40xf32>
    %c0_21 = arith.constant 0 : index
    %c0_22 = arith.constant 0 : index
    %c0_23 = arith.constant 0 : index
    %41 = vector.load %arg7[%c0_21, %c0_22, %c0_23] : memref<1x1x40xf32, #tpu.memory_space<vmem>>, vector<1x1x40xf32>
    tpu.vector_store %arg7[%c0_21, %c0_22, %c0_23], %40 {strides = array<i32>} : memref<1x1x40xf32, #tpu.memory_space<vmem>>, vector<1x1x40xf32>,
    return
  }
  func.func @transform_0(%arg0: i32) -> (i32, i32) {
    %c0_i32 = arith.constant 0 : i32
    %c0_i32_0 = arith.constant 0 : i32
    return %arg0, %c0_i32 : i32, i32
  }
  func.func @transform_1(%arg0: i32) -> (i32, i32) {
    %c0_i32 = arith.constant 0 : i32
    %c0_i32_0 = arith.constant 0 : i32
    return %arg0, %c0_i32 : i32, i32
  }
  func.func @transform_2(%arg0: i32) -> (i32, i32) {
    %c0_i32 = arith.constant 0 : i32
    %c0_i32_0 = arith.constant 0 : i32
    %c0_i32_1 = arith.constant 0 : i32
    return %c0_i32, %c0_i32_0 : i32, i32
  }
  func.func @transform_3(%arg0: i32) -> (i32, i32) {
    %c0_i32 = arith.constant 0 : i32
    %c0_i32_0 = arith.constant 0 : i32
    %c0_i32_1 = arith.constant 0 : i32
    return %c0_i32, %c0_i32_0 : i32, i32
  }
  func.func @transform_4(%arg0: i32) -> (i32, i32) {
    %c0_i32 = arith.constant 0 : i32
    %c0_i32_0 = arith.constant 0 : i32
    %c0_i32_1 = arith.constant 0 : i32
    return %c0_i32, %c0_i32_0 : i32, i32
  }
  func.func @transform_5(%arg0: i32) -> (i32, i32) {
    %c0_i32 = arith.constant 0 : i32
    %c0_i32_0 = arith.constant 0 : i32
    %c0_i32_1 = arith.constant 0 : i32
    return %c0_i32, %c0_i32_0 : i32, i32
  }
  func.func @transform_6(%arg0: i32) -> (i32, i32, i32) {
    %c0_i32 = arith.constant 0 : i32
    %c0_i32_0 = arith.constant 0 : i32
    %c0_i32_1 = arith.constant 0 : i32
    return %arg0, %c0_i32, %c0_i32_0 : i32, i32, i32
  }
}

</mosaic_0001>

<bundles_post_ra>
// kernel: tpu_custom_call.1
= control target key start
LH: loop header
LB: loop body
LE: loop exit
PB: predicated region body
PF: predicated region fallthrough
CT: control target
= control target key end

     0   :  { %11 = vsyncpa [#allocation3], 0  ;;  %s2738_s0 = inlined_call_operand.hbm [shape: f32[40,384], index: 0, kind: input, shape index: {}]   ;;  %s2739_s1 = inlined_call_operand.hbm [shape: f32[40,384], index: 1, kind: input, shape index: {}]   ;;  %s2740_s2 = inlined_call_operand.hbm [shape: bf16[384,256], index: 2, kind: input, shape index: {}]   ;;  %s2741_s3 = inlined_call_operand.vmem [shape: f32[1,256], index: 3, kind: input, shape index: {}]   ;;  %s2742_s4 = inlined_call_operand.hbm [shape: bf16[256,512], index: 4, kind: input, shape index: {}]   ;;  %s2743_s5 = inlined_call_operand.vmem [shape: f32[1,512], index: 5, kind: input, shape index: {}]   ;;  %s2744_s6 = inlined_call_operand.hbm [shape: f32[1,1,40], index: 6, kind: output, shape index: {}]  }
   0x1   :  { %12 = vsyncpa [#allocation6], 0 }
   0x2   :  { %13 = vsyncpa [#allocation9], 0 }
   0x3   :  { %14 = vsyncpa [#allocation4], 0  ;;  %s1998_s21 = smov [#allocation5]   ;;  %s1999_s23 = smov [#allocation2]  }
   0x4   :  { %s32_s22 = sshll.u32 %s1998_s21, 4  ;;  %s20_s24 = sshll.u32 %s1999_s23, 4  ;;  %s33_s22 = int_to_ptr.vmem [resolvable:$true] %s32_s22  ;;  %s21_s24 = int_to_ptr.vmem [resolvable:$true] %s20_s24 }
   0x5   :  { %s1898_s25 = scalar_lea.vmem %s33_s22, 1920  ;;  %p1903_p1 = scmp.lt.s32.totalorder %s33_s22, %s33_s22 }
   0x6   :  { %p1899_p0 = scmp.ne.s32.totalorder %s33_s22, %s1898_s25  ;;  %p1904_p2 = scmp.lt.s32.totalorder %s1898_s25, %s1898_s25 }
   0x8   :  { %p1905_p3 = por %p1904_p2, %p1903_p1 }
   0xa   :  { %p1906_p4 = pnand %p1905_p3, %p1899_p0 }
   0xc   :  { %1909 = shalt.err (!%p1906_p4)
}
   0xd   :  { %s2000_s26 = smov 384   ;;  %s2001_s27 = smov 24  }
   0xe   :  { %38 = dma.hbm_to_vmem [thread:$0]  %s2739_s1, 1920, %s33_s22, [#allocation6], %s2000_s26, %s2000_s26, %s2001_s27  }
   0xf   :  { %s1918_s30 = scalar_lea.vmem %s21_s24, 1920  ;;  %p1923_p6 = scmp.lt.s32.totalorder %s21_s24, %s21_s24 }
  0x10   :  { %p1919_p5 = scmp.ne.s32.totalorder %s21_s24, %s1918_s30  ;;  %p1924_p7 = scmp.lt.s32.totalorder %s1918_s30, %s1918_s30 }
  0x12   :  { %p1925_p8 = por %p1924_p7, %p1923_p6 }
  0x14   :  { %p1926_p9 = pnand %p1925_p8, %p1919_p5 }
  0x16   :  { %1929 = shalt.err (!%p1926_p9)
}
  0x17   :  { %26 = dma.hbm_to_vmem [thread:$0]  %s2738_s0, 1920, %s21_s24, [#allocation3], %s2000_s26, %s2000_s26, %s2001_s27  }
  0x18   :  { %s2002_s9 = smov [#allocation7]  }
  0x19   :  { %s44_s10 = sshll.u32 %s2002_s9, 4  ;;  %s45_s10 = int_to_ptr.vmem [resolvable:$true] %s44_s10 }
  0x1a   :  { %s1938_s11 = scalar_lea.vmem %s45_s10, 6144  ;;  %p1943_p11 = scmp.lt.s32.totalorder %s45_s10, %s45_s10 }
  0x1b   :  { %p1939_p10 = scmp.ne.s32.totalorder %s45_s10, %s1938_s11  ;;  %p1944_p12 = scmp.lt.s32.totalorder %s1938_s11, %s1938_s11 }
  0x1d   :  { %p1945_p13 = por %p1944_p12, %p1943_p11 }
  0x1f   :  { %p1946_p0 = pnand %p1945_p13, %p1939_p10 }
  0x21   :  { %1949 = shalt.err (!%p1946_p0)
}
  0x22   :  { %s2003_s1 = smov 128   ;;  %s2004_s12 = smov 8  }
  0x23   :  { %50 = dma.hbm_to_vmem [thread:$0]  %s2740_s2, 6144, %s45_s10, [#allocation6], %s2003_s1, %s2003_s1, %s2004_s12  }
  0x24   :  { %s2005_s15 = smov [#allocation8]  }
  0x25   :  { %s58_s16 = sshll.u32 %s2005_s15, 4  ;;  %s59_s16 = int_to_ptr.vmem [resolvable:$true] %s58_s16 }
  0x26   :  { %s1958_s0 = scalar_lea.vmem %s59_s16, 8192  ;;  %p1963_p2 = scmp.lt.s32.totalorder %s59_s16, %s59_s16 }
  0x27   :  { %p1959_p1 = scmp.ne.s32.totalorder %s59_s16, %s1958_s0  ;;  %p1964_p3 = scmp.lt.s32.totalorder %s1958_s0, %s1958_s0 }
  0x29   :  { %p1965_p4 = por %p1964_p3, %p1963_p2 }
  0x2b   :  { %p1966_p5 = pnand %p1965_p4, %p1959_p1 }
  0x2d   :  { %1969 = shalt.err (!%p1966_p5)
}
  0x2e   :  { %s2006_s17 = smov 256   ;;  %s2007_s18 = smov 16  }
  0x2f   :  { %64 = dma.hbm_to_vmem [thread:$0]  %s2742_s4, 8192, %s59_s16, [#allocation9], %s2006_s17, %s2006_s17, %s2007_s18  }
  0x30   :  { %1990 = dma.done.wait [#allocation3], 1920  }
  0x31   :  { %1991 = vsyncadd [#allocation3], 4294965376 }
  0x32   :  { %1992 = dma.done.wait [#allocation6], 8064  }
  0x33   :  { %1993 = vsyncadd [#allocation6], 4294959232 }
  0x34   :  { %1994 = dma.done.wait [#allocation9], 8192  }
  0x35   :  { %1995 = vsyncadd [#allocation9], 4294959104  ;;  %v2745_v0 = vmov 0   ;;  %v2058_v1 = vld [vmem:[#allocation7 + $0x74] ss:$8 sps:$4 sm:$0xff]   ;;  %v196_v41 = vld [vmem:[#allocation2 + $0x10] sm:$0xff] }
  0x36   :  { %562 = vmatprep.mubr.bf16.mxu1 %v2745_v0  ;;  %v2060_v2 = vld [vmem:[#allocation7 + $0x70] ss:$8 sps:$4 sm:$0xff]   ;;  %469 = vmatprep.subr.bf16.mxu0 %v2058_v1  ;;  %v2063_v3 = vld [vmem:[#allocation7 + $0x64] ss:$8 sps:$4 sm:$0xff]   ;;  %v2066_v4 = vld [vmem:[#allocation7 + $0x60] ss:$8 sps:$4 sm:$0xff]  }
  0x37   :  { %470 = vmatpush1.bf16.msra.mxu0 %v2060_v2  ;;  %v2069_v5 = vld [vmem:[#allocation7 + $0x54] ss:$8 sps:$4 sm:$0xff]   ;;  %v2072_v6 = vld [vmem:[#allocation7 + $0x50] ss:$8 sps:$4 sm:$0xff]   ;;  %v2075_v7 = vld [vmem:[#allocation7 + $0x44] ss:$8 sps:$4 sm:$0xff]  }
  0x38   :  { %471 = vmatprep.subr.bf16.mxu0 %v2063_v3  ;;  %v2078_v8 = vld [vmem:[#allocation7 + $0x40] ss:$8 sps:$4 sm:$0xff]   ;;  %v2080_v9 = vld [vmem:[#allocation7 + $0x174] ss:$8 sps:$4 sm:$0xff]   ;;  %v2082_v10 = vld [vmem:[#allocation7 + $0x170] ss:$8 sps:$4 sm:$0xff]  }
  0x39   :  { %v2085_v11 = vld [vmem:[#allocation7 + $0x34] ss:$8 sps:$4 sm:$0xff]   ;;  %530 = vmatprep.subr.bf16.mxu1 %v2080_v9  ;;  %v2088_v12 = vld [vmem:[#allocation7 + $0x164] ss:$8 sps:$4 sm:$0xff]   ;;  %v2091_v13 = vld [vmem:[#allocation7 + $0x160] ss:$8 sps:$4 sm:$0xff]  }
  0x3a   :  { %531 = vmatpush1.bf16.msra.mxu1 %v2082_v10  ;;  %v2094_v14 = vld [vmem:[#allocation7 + $0x30] ss:$8 sps:$4 sm:$0xff]   ;;  %v2098_v15 = vld [vmem:[#allocation7 + $0x24] ss:$8 sps:$4 sm:$0xff]   ;;  %v2100_v16 = vld [vmem:[#allocation7 + $0x154] ss:$8 sps:$4 sm:$0xff]  }
  0x3b   :  { %472 = vmatpush1.bf16.msra.mxu0 %v2066_v4  ;;  %532 = vmatprep.subr.bf16.mxu1 %v2088_v12  ;;  %v2103_v17 = vld [vmem:[#allocation7 + $0x150] ss:$8 sps:$4 sm:$0xff]   ;;  %v2106_v18 = vld [vmem:[#allocation7 + $0x20] ss:$8 sps:$4 sm:$0xff]   ;;  %v2109_v19 = vld [vmem:[#allocation7 + $0x144] ss:$8 sps:$4 sm:$0xff]  }
  0x3c   :  { %473 = vmatprep.subr.bf16.mxu0 %v2069_v5  ;;  %v2112_v20 = vld [vmem:[#allocation7 + $0x14] ss:$8 sps:$4 sm:$0xff]   ;;  %v2114_v21 = vld [vmem:[#allocation7 + $0x10] ss:$8 sps:$4 sm:$0xff]   ;;  %v2117_v22 = vld [vmem:[#allocation7 + $0x140] ss:$8 sps:$4 sm:$0xff]  }
  0x3d   :  { %v2121_v23 = vld [vmem:[#allocation7 + $0x134] ss:$8 sps:$4 sm:$0xff]   ;;  %v2124_v24 = vld [vmem:[#allocation7 + $0x4] ss:$8 sps:$4 sm:$0xff]   ;;  %v2127_v25 = vld [vmem:[#allocation7 + $0x130] ss:$8 sps:$4 sm:$0xff]  }
  0x3e   :  { %533 = vmatpush1.bf16.msra.mxu1 %v2091_v13  ;;  %v2130_v26 = vld [vmem:[#allocation7] ss:$8 sps:$4 sm:$0xff]   ;;  %v2133_v27 = vld [vmem:[#allocation7 + $0x124] ss:$8 sps:$4 sm:$0xff]   ;;  %v2136_v28 = vld [vmem:[#allocation7 + $0xf4] ss:$8 sps:$4 sm:$0xff]  }
  0x3f   :  { %474 = vmatpush1.bf16.msra.mxu0 %v2072_v6  ;;  %534 = vmatprep.subr.bf16.mxu1 %v2100_v16  ;;  %v2139_v29 = vld [vmem:[#allocation7 + $0x120] ss:$8 sps:$4 sm:$0xff]   ;;  %v2142_v30 = vld [vmem:[#allocation7 + $0xf0] ss:$8 sps:$4 sm:$0xff]   ;;  %v2145_v31 = vld [vmem:[#allocation7 + $0x114] ss:$8 sps:$4 sm:$0xff]  }
  0x40   :  { %475 = vmatprep.subr.bf16.mxu0 %v2075_v7  ;;  %2830 = vst [vmem:[#allocation15_spill] sm:$0xff] %v2142_v30  ;;  %v2148_v32 = vld [vmem:[#allocation7 + $0xe4] ss:$8 sps:$4 sm:$0xff]   ;;  %v195_v33 = vld [vmem:[#allocation2 + $0x8] sm:$0xff]  ;;  %v198_v34 = vld [vmem:[#allocation2 + $0x20] sm:$0xff]  ;;  %vm1535_vm0 = vcmask 130112  }
  0x41   :  { %2831 = vst [vmem:[#allocation16_spill] sm:$0xff] %v2148_v32  ;;  %v2151_v35 = vld [vmem:[#allocation7 + $0x110] ss:$8 sps:$4 sm:$0xff]   ;;  %v210_v36 = vpack.c.bf16 %v198_v34, %v195_v33  ;;  %v2154_v37 = vld [vmem:[#allocation7 + $0xe0] ss:$8 sps:$4 sm:$0xff]   ;;  %vm1542_vm1 = vcmask 195712  }
  0x42   :  { %535 = vmatpush1.bf16.msra.mxu1 %v2103_v17  ;;  %2832 = vst [vmem:[#allocation17_spill] sm:$0xff] %v2154_v37  ;;  %v2157_v38 = vld [vmem:[#allocation7 + $0x104] ss:$8 sps:$4 sm:$0xff]   ;;  %v2160_v39 = vld [vmem:[#allocation7 + $0xd4] ss:$8 sps:$4 sm:$0xff]   ;;  %vm1549_vm2 = vcmask 261312  }
  0x43   :  { %476 = vmatpush1.bf16.msra.mxu0 %v2078_v8  ;;  %536 = vmatprep.subr.bf16.mxu1 %v2109_v19  ;;  %2833 = vst [vmem:[#allocation18_spill] sm:$0xff] %v2160_v39  ;;  %v2162_v40 = vld [vmem:[#allocation7 + $0x100] ss:$8 sps:$4 sm:$0xff]   ;;  %v199_v42 = vld [vmem:[#allocation2 + $0x28] sm:$0xff]  ;;  %v2169_v44 = vld [vmem:[#allocation8 + $0xe4] ss:$16 sps:$4 sm:$0xff]  }
  0x44   :  { %477 = vmatprep.subr.bf16.mxu0 %v2085_v11  ;;  %501 = vmatprep.mubr.bf16.mxu0 %v210_v36  ;;  %v2166_v43 = vld [vmem:[#allocation7 + $0xd0] ss:$8 sps:$4 sm:$0xff]   ;;  %v2172_v45 = vld [vmem:[#allocation7 + $0xc4] ss:$8 sps:$4 sm:$0xff]   ;;  %v211_v46 = vpack.c.bf16 %v199_v42, %v196_v41  ;;  %v2178_v48 = vld [vmem:[#allocation7 + $0xc0] ss:$8 sps:$4 sm:$0xff]  }
  0x45   :  { %2834 = vst [vmem:[#allocation19_spill] sm:$0xff] %v2166_v43  ;;  %2835 = vst [vmem:[#allocation20_spill] sm:$0xff] %v2172_v45  ;;  %v2175_v47 = vld [vmem:[#allocation8 + $0xe0] ss:$16 sps:$4 sm:$0xff]   ;;  %v2181_v49 = vld [vmem:[#allocation8 + $0xc4] ss:$16 sps:$4 sm:$0xff]  }
  0x46   :  { %537 = vmatpush1.bf16.msra.mxu1 %v2117_v22  ;;  %2836 = vst [vmem:[#allocation21_spill] sm:$0xff] %v2175_v47  ;;  %2837 = vst [vmem:[#allocation22_spill] sm:$0xff] %v2178_v48  ;;  %v2184_v50 = vld [vmem:[#allocation7 + $0xb4] ss:$8 sps:$4 sm:$0xff]   ;;  %v205_v52 = vld [vmem:[#allocation2 + $0x58] sm:$0xff]  ;;  %vm1556_vm3 = vcmask 326912  }
  0x47   :  { %478 = vmatpush1.bf16.msra.mxu0 %v2094_v14  ;;  %538 = vmatprep.subr.bf16.mxu1 %v2121_v23  ;;  %2838 = vst [vmem:[#allocation23_spill] sm:$0xff] %v2181_v49  ;;  %2839 = vst [vmem:[#allocation24_spill] sm:$0xff] %v2184_v50  ;;  %v202_v51 = vld [vmem:[#allocation2 + $0x40] sm:$0xff]  ;;  %v2197_v56 = vld [vmem:[#allocation7 + $0xa4] ss:$8 sps:$4 sm:$0xff]   ;;  %vm1559_vm4 = vcmask 319488  }
  0x48   :  { %479 = vmatprep.subr.bf16.mxu0 %v2098_v15  ;;  %v2188_v53 = vld [vmem:[#allocation8 + $0xc0] ss:$16 sps:$4 sm:$0xff]   ;;  %v2194_v55 = vld [vmem:[#allocation8 + $0xa4] ss:$16 sps:$4 sm:$0xff]   ;;  %2843 = vst [vmem:[#allocation28_spill] sm:$0xff] %v2197_v56  ;;  %v214_v57 = vpack.c.bf16 %v205_v52, %v202_v51 }
  0x49   :  { %2840 = vst [vmem:[#allocation25_spill] sm:$0xff] %v2188_v53  ;;  %v2191_v54 = vld [vmem:[#allocation7 + $0xb0] ss:$8 sps:$4 sm:$0xff]   ;;  %2842 = vst [vmem:[#allocation27_spill] sm:$0xff] %v2194_v55  ;;  %v2203_v59 = vld [vmem:[#allocation7 + $0xa0] ss:$8 sps:$4 sm:$0xff]  }
  0x4a   :  { %539 = vmatpush1.bf16.msra.mxu1 %v2127_v25  ;;  %2841 = vst [vmem:[#allocation26_spill] sm:$0xff] %v2191_v54  ;;  %v2200_v58 = vld [vmem:[#allocation8 + $0xa0] ss:$16 sps:$4 sm:$0xff]   ;;  %2845 = vst [vmem:[#allocation30_spill] sm:$0xff] %v2203_v59  ;;  %v2206_v60 = vld [vmem:[#allocation8 + $0x84] ss:$16 sps:$4 sm:$0xff]  }
  0x4b   :  { %480 = vmatpush1.bf16.msra.mxu0 %v2106_v18  ;;  %540 = vmatprep.subr.bf16.mxu1 %v2133_v27  ;;  %2844 = vst [vmem:[#allocation29_spill] sm:$0xff] %v2200_v58  ;;  %2846 = vst [vmem:[#allocation31_spill] sm:$0xff] %v2206_v60  ;;  %v2209_v61 = vld [vmem:[#allocation7 + $0x94] ss:$8 sps:$4 sm:$0xff]   ;;  %v208_v62 = vld [vmem:[#allocation2 + $0x70] sm:$0xff] }
  0x4c   :  { %481 = vmatprep.subr.bf16.mxu0 %v2112_v20  ;;  %2847 = vst [vmem:[#allocation32_spill] sm:$0xff] %v2209_v61  ;;  %v2213_v63 = vld [vmem:[#allocation8 + $0x80] ss:$16 sps:$4 sm:$0xff]   ;;  %v2219_v34 = vld [vmem:[#allocation8 + $0x64] ss:$16 sps:$4 sm:$0xff]   ;;  %v217_v51 = vpack.c.bf16 %v208_v62, %v208_v62 }
  0x4d   :  { %2848 = vst [vmem:[#allocation33_spill] sm:$0xff] %v2213_v63  ;;  %v2216_v33 = vld [vmem:[#allocation7 + $0x90] ss:$8 sps:$4 sm:$0xff]   ;;  %2850 = vst [vmem:[#allocation35_spill] sm:$0xff] %v2219_v34  ;;  %v2222_v36 = vld [vmem:[#allocation7 + $0x84] ss:$8 sps:$4 sm:$0xff]  }
  0x4e   :  { %541 = vmatpush1.bf16.msra.mxu1 %v2139_v29  ;;  %2849 = vst [vmem:[#allocation34_spill] sm:$0xff] %v2216_v33  ;;  %2851 = vst [vmem:[#allocation36_spill] sm:$0xff] %v2222_v36  ;;  %v2224_v41 = vld [vmem:[#allocation7 + $0x80] ss:$8 sps:$4 sm:$0xff]   ;;  %v194_v42 = vld [vmem:[#allocation2] sm:$0xff] }
  0x4f   :  { %482 = vmatpush1.bf16.msra.mxu0 %v2114_v21  ;;  %542 = vmatprep.subr.bf16.mxu1 %v2145_v31  ;;  %2852 = vst [vmem:[#allocation37_spill] sm:$0xff] %v2224_v41  ;;  %v2227_v52 = vld [vmem:[#allocation8 + $0x60] ss:$16 sps:$4 sm:$0xff]  }
  0x50   :  { %483 = vmatprep.subr.bf16.mxu0 %v2124_v24  ;;  %2853 = vst [vmem:[#allocation38_spill] sm:$0xff] %v2227_v52  ;;  %v2237_v62 = vld [vmem:[#allocation8 + $0x40] ss:$16 sps:$4 sm:$0xff]  }
  0x51   :  { %2856 = vst [vmem:[#allocation41_spill] sm:$0xff] %v2237_v62 }
  0x52   :  { %543 = vmatpush1.bf16.msra.mxu1 %v2151_v35 }
  0x53   :  { %484 = vmatpush1.bf16.msra.mxu0 %v2130_v26  ;;  %544 = vmatprep.subr.bf16.mxu1 %v2157_v38 }
  0x54   :  { %485 = vmatprep.subr.bf16.mxu0 %v2136_v28 }
  0x56   :  { %545 = vmatpush1.bf16.msra.mxu1 %v2162_v40 }
  0x57   :  { %486 = vmatpush2.bf16.msra.mxu0 %v2142_v30  ;;  %948 = vmatprep.subr.bf16.mxu1 %v2169_v44 }
  0x58   :  { %487 = vmatprep.subr.bf16.mxu0 %v2148_v32 }
  0x59   :  { %563 = vmatmul.mubr.bf16.vlgmr.msra.gmra.mxu1 %v211_v46  ;;  %v197_v46 = vld [vmem:[#allocation2 + $0x18] sm:$0xff] }
  0x5a   :  { %572 = vmatprep.mubr.bf16.mxu1 %v2745_v0  ;;  %949 = vmatpush1.bf16.msra.mxu1 %v2175_v47 }
  0x5b   :  { %488 = vmatpush2.bf16.msra.mxu0 %v2154_v37  ;;  %950 = vmatprep.subr.bf16.mxu1 %v2181_v49 }
  0x5c   :  { %489 = vmatprep.subr.bf16.mxu0 %v2160_v39 }
  0x5e   :  { %951 = vmatpush1.bf16.msra.mxu1 %v2188_v53 }
  0x5f   :  { %490 = vmatpush2.bf16.msra.mxu0 %v2166_v43  ;;  %952 = vmatprep.subr.bf16.mxu1 %v2194_v55 }
  0x60   :  { %491 = vmatprep.subr.bf16.mxu0 %v2172_v45 }
  0x61   :  { %573 = vmatmul.mubr.bf16.gmra.mxu1 %v214_v57  ;;  %v201_v57 = vld [vmem:[#allocation2 + $0x38] sm:$0xff] }
  0x62   :  { %582 = vmatprep.mubr.bf16.mxu1 %v2745_v0  ;;  %953 = vmatpush1.bf16.msra.mxu1 %v2200_v58  ;;  %v2231_v0 = vld [vmem:[#allocation8 + $0x44] ss:$16 sps:$4 sm:$0xff]  }
  0x63   :  { %492 = vmatpush2.bf16.msra.mxu0 %v2178_v48  ;;  %954 = vmatprep.subr.bf16.mxu1 %v2206_v60  ;;  %2854 = vst [vmem:[#allocation39_spill] sm:$0xff] %v2231_v0 }
  0x64   :  { %493 = vmatprep.subr.bf16.mxu0 %v2184_v50 }
  0x66   :  { %955 = vmatpush1.bf16.msra.mxu1 %v2213_v63  ;;  %v200_v63 = vld [vmem:[#allocation2 + $0x30] sm:$0xff] }
  0x67   :  { %494 = vmatpush2.bf16.msra.mxu0 %v2191_v54  ;;  %956 = vmatprep.subr.bf16.mxu1 %v2219_v34  ;;  %v2244_v34 = vld [vmem:[#allocation8 + $0xcc] ss:$16 sps:$4 sm:$0xff]  }
  0x68   :  { %495 = vmatprep.subr.bf16.mxu0 %v2197_v56  ;;  %v209_v56 = vpack.c.bf16 %v197_v46, %v194_v42  ;;  %2858 = vst [vmem:[#allocation43_spill] sm:$0xff] %v2244_v34  ;;  %v2248_v42 = vld [vmem:[#allocation8 + $0xc8] ss:$16 sps:$4 sm:$0xff]  }
  0x69   :  { %583 = vmatmul.mubr.bf16.gmra.mxu1 %v217_v51  ;;  %v203_v51 = vld [vmem:[#allocation2 + $0x48] sm:$0xff]  ;;  %2860 = vst [vmem:[#allocation45_spill] sm:$0xff] %v2248_v42 }
  0x6a   :  { %957 = vmatpush1.bf16.msra.mxu1 %v2227_v52  ;;  %v207_v46 = vld [vmem:[#allocation2 + $0x68] sm:$0xff] }
  0x6b   :  { %496 = vmatpush2.bf16.msra.mxu0 %v2203_v59  ;;  %v2234_v59 = vld [vmem:[#allocation8 + $0xec] ss:$16 sps:$4 sm:$0xff]   ;;  %958 = vmatprep.subr.bf16.mxu1 %v2231_v0  ;;  %v2262_v0 = vld [vmem:[#allocation8 + $0xa8] ss:$16 sps:$4 sm:$0xff]  }
  0x6c   :  { %497 = vmatprep.subr.bf16.mxu0 %v2209_v61  ;;  %v204_v61 = vld [vmem:[#allocation2 + $0x50] sm:$0xff]  ;;  %2855 = vst [vmem:[#allocation40_spill] sm:$0xff] %v2234_v59  ;;  %2865 = vst [vmem:[#allocation50_spill] sm:$0xff] %v2262_v0  ;;  %v2264_v52 = vld [vmem:[#allocation8 + $0x8c] ss:$16 sps:$4 sm:$0xff]  }
  0x6d   :  { %v213_v54 = vpack.c.bf16 %v204_v61, %v201_v57  ;;  %v2254_v61 = vld [vmem:[#allocation8 + $0xac] ss:$16 sps:$4 sm:$0xff]   ;;  %v2256_v57 = vld [vmem:[#allocation8 + $0x4] ss:$16 sps:$4 sm:$0xff]   ;;  %2866 = vst [vmem:[#allocation51_spill] sm:$0xff] %v2264_v52 }
  0x6e   :  { %959 = vmatpush1.bf16.msra.mxu1 %v2237_v62  ;;  %2862 = vst [vmem:[#allocation47_spill] sm:$0xff] %v2254_v61  ;;  %2863 = vst [vmem:[#allocation48_spill] sm:$0xff] %v2256_v57 }
  0x6f   :  { %498 = vmatpush2.bf16.msra.mxu0 %v2216_v33  ;;  %v2240_v33 = vld [vmem:[#allocation8 + $0xe8] ss:$16 sps:$4 sm:$0xff]  }
  0x70   :  { %499 = vmatprep.subr.bf16.mxu0 %v2222_v36  ;;  %2857 = vst [vmem:[#allocation42_spill] sm:$0xff] %v2240_v33  ;;  %v2246_v36 = vld [vmem:[#allocation8 + $0x24] ss:$16 sps:$4 sm:$0xff]  }
  0x71   :  { %2859 = vst [vmem:[#allocation44_spill] sm:$0xff] %v2246_v36  ;;  %960 = vmatprep.subr.bf16.mxu1 %v2246_v36 }
  0x73   :  { %500 = vmatpush2.bf16.msra.mxu0 %v2224_v41  ;;  %v2251_v41 = vld [vmem:[#allocation8 + $0x20] ss:$16 sps:$4 sm:$0xff]  }
  0x74   :  { %1009 = vmatprep.subr.bf16.mxu0 %v2234_v59  ;;  %2861 = vst [vmem:[#allocation46_spill] sm:$0xff] %v2251_v41  ;;  %v2260_v59 = vld [vmem:[#allocation8] ss:$16 sps:$4 sm:$0xff]   ;;  %961 = vmatpush1.bf16.msra.mxu1 %v2251_v41  ;;  %v2278_v41 = vld [vmem:[#allocation8 + $0x1c4] ss:$16 sps:$4 sm:$0xff]  }
  0x75   :  { %2864 = vst [vmem:[#allocation49_spill] sm:$0xff] %v2260_v59  ;;  %962 = vmatprep.subr.bf16.mxu1 %v2256_v57  ;;  %2870 = vst [vmem:[#allocation55_spill] sm:$0xff] %v2278_v41 }
  0x76   :  { %502 = vmatmul.mubr.bf16.vlgmr.msra.gmra.mxu0 %v209_v56  ;;  %v212_v56 = vpack.c.bf16 %v203_v51, %v200_v63  ;;  %v206_v63 = vld [vmem:[#allocation2 + $0x60] sm:$0xff]  ;;  %v2276_v51 = vld [vmem:[#allocation8 + $0x88] ss:$16 sps:$4 sm:$0xff]  }
  0x77   :  { %511 = vmatprep.mubr.bf16.mxu0 %v213_v54  ;;  %1010 = vmatpush1.bf16.msra.mxu0 %v2240_v33  ;;  %v2267_v54 = vld [vmem:[#allocation8 + $0x1e4] ss:$16 sps:$4 sm:$0xff]   ;;  %v216_v33 = vpack.c.bf16 %v207_v46, %v207_v46  ;;  %2869 = vst [vmem:[#allocation54_spill] sm:$0xff] %v2276_v51  ;;  %v2281_v46 = vld [vmem:[#allocation8 + $0x6c] ss:$16 sps:$4 sm:$0xff]  }
  0x78   :  { %1011 = vmatprep.subr.bf16.mxu0 %v2244_v34  ;;  %2867 = vst [vmem:[#allocation52_spill] sm:$0xff] %v2267_v54  ;;  %963 = vmatpush1.bf16.msra.mxu1 %v2260_v59  ;;  %v2273_v34 = vld [vmem:[#allocation8 + $0x1e0] ss:$16 sps:$4 sm:$0xff]   ;;  %2871 = vst [vmem:[#allocation56_spill] sm:$0xff] %v2281_v46 }
  0x79   :  { %2868 = vst [vmem:[#allocation53_spill] sm:$0xff] %v2273_v34  ;;  %964 = vmatprep.subr.bf16.mxu1 %v2267_v54 }
  0x7b   :  { %1012 = vmatpush1.bf16.msra.mxu0 %v2248_v42  ;;  %v2300_v42 = vld [vmem:[#allocation8 + $0x48] ss:$16 sps:$4 sm:$0xff]  }
  0x7c   :  { %1013 = vmatprep.subr.bf16.mxu0 %v2254_v61  ;;  %v215_v61 = vpack.c.bf16 %v206_v63, %v206_v63  ;;  %965 = vmatpush2.bf16.msra.mxu1 %v2273_v34  ;;  %v2297_v63 = vld [vmem:[#allocation8 + $0x1a0] ss:$16 sps:$4 sm:$0xff]   ;;  %2877 = vst [vmem:[#allocation62_spill] sm:$0xff] %v2300_v42 }
  0x7d   :  { %966 = vmatprep.subr.bf16.mxu1 %v2278_v41  ;;  %2876 = vst [vmem:[#allocation61_spill] sm:$0xff] %v2297_v63  ;;  %v2306_v41 = vld [vmem:[#allocation8 + $0x2c] ss:$16 sps:$4 sm:$0xff]  }
  0x7e   :  { %512 = vmatmul.mubr.bf16.gmra.mxu0 %v212_v56  ;;  %v2285_v56 = vld [vmem:[#allocation8 + $0x1c0] ss:$16 sps:$4 sm:$0xff]   ;;  %2879 = vst [vmem:[#allocation64_spill] sm:$0xff] %v2306_v41 }
  0x7f   :  { %521 = vmatprep.mubr.bf16.mxu0 %v216_v33  ;;  %1014 = vmatpush1.bf16.msra.mxu0 %v2262_v0  ;;  %2872 = vst [vmem:[#allocation57_spill] sm:$0xff] %v2285_v56  ;;  %v2288_v33 = vld [vmem:[#allocation8 + $0x68] ss:$16 sps:$4 sm:$0xff]   ;;  %v2291_v0 = vld [vmem:[#allocation8 + $0x1a4] ss:$16 sps:$4 sm:$0xff]  }
  0x80   :  { %1015 = vmatprep.subr.bf16.mxu0 %v2264_v52  ;;  %2873 = vst [vmem:[#allocation58_spill] sm:$0xff] %v2288_v33  ;;  %2874 = vst [vmem:[#allocation59_spill] sm:$0xff] %v2291_v0  ;;  %v2294_v52 = vld [vmem:[#allocation8 + $0x4c] ss:$16 sps:$4 sm:$0xff]   ;;  %967 = vmatpush2.bf16.msra.mxu1 %v2285_v56  ;;  %v2810_v56 = vlaneseq }
  0x81   :  { %2875 = vst [vmem:[#allocation60_spill] sm:$0xff] %v2294_v52  ;;  %968 = vmatprep.subr.bf16.mxu1 %v2291_v0 }
  0x82   :  { %v2399_v54 = vshrl.u32 %v2810_v56, 7 }
  0x83   :  { %1016 = vmatpush1.bf16.msra.mxu0 %v2276_v51  ;;  %v2303_v51 = vld [vmem:[#allocation8 + $0x184] ss:$16 sps:$4 sm:$0xff]  }
  0x84   :  { %1017 = vmatprep.subr.bf16.mxu0 %v2281_v46  ;;  %2878 = vst [vmem:[#allocation63_spill] sm:$0xff] %v2303_v51  ;;  %969 = vmatpush2.bf16.msra.mxu1 %v2297_v63  ;;  %v2309_v46 = vld [vmem:[#allocation8 + $0x180] ss:$16 sps:$4 sm:$0xff]   ;;  %v2323_v63 = vld [vmem:[#allocation8 + $0x1ec] ss:$16 sps:$4 sm:$0xff]   ;;  %2908 = vst [vmem:[#allocation93_spill] sm:$0xff] %v2399_v54 }
  0x85   :  { %2880 = vst [vmem:[#allocation65_spill] sm:$0xff] %v2309_v46  ;;  %970 = vmatprep.subr.bf16.mxu1 %v2303_v51  ;;  %2884 = vst [vmem:[#allocation69_spill] sm:$0xff] %v2323_v63  ;;  %v2329_v51 = vld [vmem:[#allocation8 + $0x1cc] ss:$16 sps:$4 sm:$0xff]  }
  0x86   :  { %522 = vmatmul.mubr.bf16.gmra.mxu0 %v215_v61  ;;  %v2312_v61 = vld [vmem:[#allocation8 + $0x28] ss:$16 sps:$4 sm:$0xff]   ;;  %2886 = vst [vmem:[#allocation71_spill] sm:$0xff] %v2329_v51 }
  0x87   :  { %1018 = vmatpush1.bf16.msra.mxu0 %v2288_v33  ;;  %2881 = vst [vmem:[#allocation66_spill] sm:$0xff] %v2312_v61  ;;  %v2316_v33 = vld [vmem:[#allocation8 + $0xc] ss:$16 sps:$4 sm:$0xff]  }
  0x88   :  { %1019 = vmatprep.subr.bf16.mxu0 %v2294_v52  ;;  %2882 = vst [vmem:[#allocation67_spill] sm:$0xff] %v2316_v33  ;;  %971 = vmatpush2.bf16.msra.mxu1 %v2309_v46  ;;  %v2320_v52 = vld [vmem:[#allocation8 + $0x8] ss:$16 sps:$4 sm:$0xff]   ;;  %v2349_v46 = vld [vmem:[#allocation8 + $0x164] ss:$16 sps:$4 sm:$0xff]  }
  0x89   :  { %2883 = vst [vmem:[#allocation68_spill] sm:$0xff] %v2320_v52  ;;  %2893 = vst [vmem:[#allocation78_spill] sm:$0xff] %v2349_v46  ;;  %972 = vmatprep.subr.bf16.mxu1 %v2349_v46  ;;  %v2379_v46 = vld [vmem:[#allocation8 + $0x128] ss:$16 sps:$4 sm:$0xff]  }
  0x8a   :  { %2903 = vst [vmem:[#allocation88_spill] sm:$0xff] %v2379_v46 }
  0x8b   :  { %1020 = vmatpush1.bf16.msra.mxu0 %v2300_v42  ;;  %v2326_v42 = vld [vmem:[#allocation8 + $0x1e8] ss:$16 sps:$4 sm:$0xff]  }
  0x8c   :  { %1021 = vmatprep.subr.bf16.mxu0 %v2306_v41  ;;  %2885 = vst [vmem:[#allocation70_spill] sm:$0xff] %v2326_v42  ;;  %v2332_v41 = vld [vmem:[#allocation8 + $0x1c8] ss:$16 sps:$4 sm:$0xff]  }
  0x8d   :  { %2887 = vst [vmem:[#allocation72_spill] sm:$0xff] %v2332_v41 }
  0x8f   :  { %1022 = vmatpush1.bf16.msra.mxu0 %v2312_v61  ;;  %v2335_v61 = vld [vmem:[#allocation8 + $0x1ac] ss:$16 sps:$4 sm:$0xff]  }
  0x90   :  { %1023 = vmatprep.subr.bf16.mxu0 %v2316_v33  ;;  %2888 = vst [vmem:[#allocation73_spill] sm:$0xff] %v2335_v61  ;;  %v2338_v33 = vld [vmem:[#allocation8 + $0x1a8] ss:$16 sps:$4 sm:$0xff]  }
  0x91   :  { %2889 = vst [vmem:[#allocation74_spill] sm:$0xff] %v2338_v33 }
  0x93   :  { %1024 = vmatpush1.bf16.msra.mxu0 %v2320_v52  ;;  %v2342_v52 = vld [vmem:[#allocation8 + $0x188] ss:$16 sps:$4 sm:$0xff]  }
  0x94   :  { %1025 = vmatprep.subr.bf16.mxu0 %v2323_v63  ;;  %2890 = vst [vmem:[#allocation75_spill] sm:$0xff] %v2342_v52  ;;  %v2344_v63 = vld [vmem:[#allocation8 + $0x18c] ss:$16 sps:$4 sm:$0xff]  }
  0x95   :  { %2891 = vst [vmem:[#allocation76_spill] sm:$0xff] %v2344_v63 }
  0x97   :  { %1026 = vmatpush2.bf16.msra.mxu0 %v2326_v42  ;;  %v2347_v42 = vld [vmem:[#allocation8 + $0x160] ss:$16 sps:$4 sm:$0xff]  }
  0x98   :  { %1027 = vmatprep.subr.bf16.mxu0 %v2329_v51  ;;  %2892 = vst [vmem:[#allocation77_spill] sm:$0xff] %v2347_v42  ;;  %973 = vmatpush2.bf16.msra.mxu1 %v2347_v42  ;;  %v2364_v51 = vld [vmem:[#allocation8 + $0x14c] ss:$16 sps:$4 sm:$0xff]   ;;  %v2372_v42 = vld [vmem:[#allocation8 + $0x124] ss:$16 sps:$4 sm:$0xff]  }
  0x99   :  { %2898 = vst [vmem:[#allocation83_spill] sm:$0xff] %v2364_v51  ;;  %2900 = vst [vmem:[#allocation85_spill] sm:$0xff] %v2372_v42 }
  0x9b   :  { %1028 = vmatpush2.bf16.msra.mxu0 %v2332_v41  ;;  %v2354_v41 = vld [vmem:[#allocation8 + $0x16c] ss:$16 sps:$4 sm:$0xff]  }
  0x9c   :  { %1029 = vmatprep.subr.bf16.mxu0 %v2335_v61  ;;  %2894 = vst [vmem:[#allocation79_spill] sm:$0xff] %v2354_v41  ;;  %v2356_v61 = vld [vmem:[#allocation8 + $0x168] ss:$16 sps:$4 sm:$0xff]  }
  0x9d   :  { %2895 = vst [vmem:[#allocation80_spill] sm:$0xff] %v2356_v61 }
  0x9f   :  { %1030 = vmatpush2.bf16.msra.mxu0 %v2338_v33  ;;  %v2360_v33 = vld [vmem:[#allocation8 + $0x144] ss:$16 sps:$4 sm:$0xff]  }
  0xa0   :  { %1031 = vmatprep.subr.bf16.mxu0 %v2344_v63  ;;  %2896 = vst [vmem:[#allocation81_spill] sm:$0xff] %v2360_v33  ;;  %v2362_v63 = vld [vmem:[#allocation8 + $0x140] ss:$16 sps:$4 sm:$0xff]   ;;  %974 = vmatprep.subr.bf16.mxu1 %v2360_v33  ;;  %v2391_v33 = vld [vmem:[#allocation8 + $0x108] ss:$16 sps:$4 sm:$0xff]  }
  0xa1   :  { %2897 = vst [vmem:[#allocation82_spill] sm:$0xff] %v2362_v63  ;;  %975 = vmatpush2.bf16.msra.mxu1 %v2362_v63  ;;  %v2384_v63 = vld [vmem:[#allocation8 + $0x104] ss:$16 sps:$4 sm:$0xff]   ;;  %2907 = vst [vmem:[#allocation92_spill] sm:$0xff] %v2391_v33 }
  0xa2   :  { %976 = vmatprep.subr.bf16.mxu1 %v2372_v42  ;;  %2904 = vst [vmem:[#allocation89_spill] sm:$0xff] %v2384_v63 }
  0xa3   :  { %1032 = vmatpush2.bf16.msra.mxu0 %v2342_v52  ;;  %v2367_v52 = vld [vmem:[#allocation8 + $0x148] ss:$16 sps:$4 sm:$0xff]  }
  0xa4   :  { %1033 = vmatprep.subr.bf16.mxu0 %v2354_v41  ;;  %2899 = vst [vmem:[#allocation84_spill] sm:$0xff] %v2367_v52  ;;  %v2374_v41 = vld [vmem:[#allocation8 + $0x120] ss:$16 sps:$4 sm:$0xff]  }
  0xa5   :  { %2901 = vst [vmem:[#allocation86_spill] sm:$0xff] %v2374_v41  ;;  %977 = vmatpush2.bf16.msra.mxu1 %v2374_v41 }
  0xa6   :  { %978 = vmatprep.subr.bf16.mxu1 %v2384_v63 }
  0xa7   :  { %1034 = vmatpush2.bf16.msra.mxu0 %v2356_v61  ;;  %v2376_v61 = vld [vmem:[#allocation8 + $0x12c] ss:$16 sps:$4 sm:$0xff]  }
  0xa8   :  { %1035 = vmatprep.subr.bf16.mxu0 %v2364_v51  ;;  %2902 = vst [vmem:[#allocation87_spill] sm:$0xff] %v2376_v61  ;;  %v2386_v51 = vld [vmem:[#allocation8 + $0x100] ss:$16 sps:$4 sm:$0xff]  }
  0xa9   :  { %2905 = vst [vmem:[#allocation90_spill] sm:$0xff] %v2386_v51  ;;  %979 = vmatpush2.bf16.msra.mxu1 %v2386_v51 }
  0xaa   :  { %1094 = vmatprep.subr.bf16.mxu1 %v2058_v1  ;;  %v128_v1 = vld [vmem:[%s2741_s3] sm:$0x3] }
  0xab   :  { %1036 = vmatpush2.bf16.msra.mxu0 %v2367_v52  ;;  %v2388_v52 = vld [vmem:[#allocation8 + $0x10c] ss:$16 sps:$4 sm:$0xff]  }
  0xac   :  { %1037 = vmatprep.subr.bf16.mxu0 %v2376_v61  ;;  %2906 = vst [vmem:[#allocation91_spill] sm:$0xff] %v2388_v52 }
  0xaf   :  { %1038 = vmatpush2.bf16.msra.mxu0 %v2379_v46 }
  0xb0   :  { %1039 = vmatprep.subr.bf16.mxu0 %v2388_v52  ;;  %v2821_v52 = vsub.s32 1, %v2399_v54 }
  0xb2   :  { %v2408_v57 = vrot.slane %v128_v1, %v2821_v52 }
  0xb3   :  { %1040 = vmatpush2.bf16.msra.mxu0 %v2391_v33  ;;  %v2825_v33 = vsub.s32 0, %v2399_v54 }
  0xb4   :  { %1155 = vmatprep.subr.bf16.mxu0 %v2080_v9 }
  0xb5   :  { %v2412_v56 = vrot.slane %v128_v1, %v2825_v33 }
 0x119   :  { %v564_v46 = vpop.f32.mrf.mxu1 }
 0x11b   :  { %v566_v61 = vpop.f32.mrf.mxu1 }
 0x11d   :  { %v568_v41 = vpop.f32.mrf.mxu1 }
 0x11f   :  { %v570_v42 = vpop.f32.mrf.mxu1 }
 0x121   :  { %v574_v0 = vpop.f32.mrf.mxu1 }
 0x123   :  { %v576_v34 = vpop.f32.mrf.mxu1 }
 0x125   :  { %v578_v63 = vpop.f32.mrf.mxu1 }
 0x127   :  { %v580_v51 = vpop.f32.mrf.mxu1 }
 0x129   :  { %v584_v59 = vpop.f32.mrf.mxu1 }
 0x12b   :  { %v586_v9 = vpop.f32.mrf.mxu1 }
 0x12d   :  { %v588_v36 = vpop.f32.mrf.mxu1 }
 0x12f   :  { %v589_v50 = vpop.f32.mrf.mxu1 }
 0x136   :  { %v503_v62 = vpop.f32.mrf.mxu0 }
 0x137   :  { %v504_v58 = vadd.f32 %v503_v62, %v2412_v56 }
 0x138   :  { %v505_v48 = vpop.f32.mrf.mxu0 }
 0x139   :  { %v506_v60 = vadd.f32 %v505_v48, %v2408_v57  ;;  %v565_v36 = vadd.f32 %v564_v46, %v504_v58 }
 0x13a   :  { %v507_v45 = vpop.f32.mrf.mxu0 }
 0x13b   :  { %v508_v43 = vadd.f32 %v507_v45, %v2412_v56  ;;  %v567_v53 = vadd.f32 %v566_v61, %v506_v60  ;;  %v591_v62 = vmax.f32 %v565_v36, 0.0  ;;  %v2927_v61 = vld [vmem:[#allocation28_spill] sm:$0xff]  ;;  %v2929_v36 = vld [vmem:[#allocation39_spill] sm:$0xff] }
 0x13c   :  { %v509_v55 = vpop.f32.mrf.mxu0 }
 0x13d   :  { %v569_v39 = vadd.f32 %v568_v41, %v508_v43  ;;  %v510_v52 = vadd.f32 %v509_v55, %v2408_v57  ;;  %v592_v49 = vmax.f32 %v567_v53, 0.0 }
 0x13e   :  { %v513_v37 = vpop.f32.mrf.mxu0 }
 0x13f   :  { %v571_v54 = vadd.f32 %v570_v42, %v510_v52  ;;  %v514_v1 = vadd.f32 %v513_v37, %v2412_v56  ;;  %v593_v33 = vmax.f32 %v569_v39, 0.0 }
 0x140   :  { %v515_v50 = vpop.f32.mrf.mxu0 }
 0x141   :  { %v594_v47 = vmax.f32 %v571_v54, 0.0  ;;  %v516_v48 = vadd.f32 %v515_v50, %v2408_v57  ;;  %v575_v32 = vadd.f32 %v574_v0, %v514_v1  ;;  %v601_v41 = vpack.c.bf16 %v593_v33, %v591_v62  ;;  %v2925_v33 = vld [vmem:[#allocation35_spill] sm:$0xff]  ;;  %v2930_v1 = vld [vmem:[#allocation30_spill] sm:$0xff]  ;;  %v2931_v50 = vld [vmem:[#allocation32_spill] sm:$0xff] }
 0x142   :  { %v517_v30 = vpop.f32.mrf.mxu0  ;;  %v2933_v62 = vld [vmem:[#allocation44_spill] sm:$0xff] }
 0x143   :  { %v602_v45 = vpack.c.bf16 %v594_v47, %v592_v49  ;;  %v518_v60 = vadd.f32 %v517_v30, %v2412_v56  ;;  %v577_v43 = vadd.f32 %v576_v34, %v516_v48  ;;  %v595_v39 = vmax.f32 %v575_v32, 0.0  ;;  %v2932_v48 = vld [vmem:[#allocation41_spill] sm:$0xff] }
 0x144   :  { %v519_v55 = vpop.f32.mrf.mxu0 }
 0x145   :  { %980 = vmatprep.mubr.bf16.mxu1 %v602_v45  ;;  %1041 = vmatprep.mubr.bf16.mxu0 %v602_v45  ;;  %v520_v58 = vadd.f32 %v519_v55, %v2408_v57  ;;  %v579_v37 = vadd.f32 %v578_v63, %v518_v60  ;;  %v596_v52 = vmax.f32 %v577_v43, 0.0  ;;  %v2926_v63 = vld [vmem:[#allocation26_spill] sm:$0xff]  ;;  %v1070_v60 = vld [vmem:[#allocation5] sm:$0xff] }
 0x146   :  { %981 = vmatmul.mubr.bf16.vlgmr.msra.gmra.mxu1 %v601_v41  ;;  %1042 = vmatmul.mubr.bf16.vlgmr.msra.gmra.mxu0 %v601_v41  ;;  %v523_v53 = vpop.f32.mrf.mxu0  ;;  %v2934_v45 = vld [vmem:[#allocation34_spill] sm:$0xff]  ;;  %v2935_v41 = vld [vmem:[#allocation36_spill] sm:$0xff] }
 0x147   :  { %1095 = vmatpush1.bf16.msra.mxu1 %v2060_v2  ;;  %v597_v0 = vmax.f32 %v579_v37, 0.0  ;;  %v581_v42 = vadd.f32 %v580_v51, %v520_v58  ;;  %1156 = vmatpush1.bf16.msra.mxu0 %v2082_v10  ;;  %v524_v30 = vadd.f32 %v523_v53, %v2412_v56  ;;  %v1073_v43 = vld [vmem:[#allocation5 + $0x18] sm:$0xff]  ;;  %v1080_v58 = vld [vmem:[#allocation5 + $0x50] sm:$0xff] }
 0x148   :  { %1096 = vmatprep.subr.bf16.mxu1 %v2063_v3  ;;  %1157 = vmatprep.subr.bf16.mxu0 %v2088_v12  ;;  %v525_v47 = vpop.f32.mrf.mxu0  ;;  %v1077_v55 = vld [vmem:[#allocation5 + $0x38] sm:$0xff]  ;;  %v1085_v53 = vpack.c.bf16 %v1073_v43, %v1070_v60  ;;  %v2985_v43 = vld [vmem:[#allocation88_spill] sm:$0xff] }
 0x149   :  { %v598_v49 = vmax.f32 %v581_v42, 0.0  ;;  %v526_v34 = vadd.f32 %v525_v47, %v2408_v57  ;;  %v603_v54 = vpack.c.bf16 %v597_v0, %v595_v39  ;;  %v585_v32 = vadd.f32 %v584_v59, %v524_v30  ;;  %v2924_v59 = vld [vmem:[#allocation33_spill] sm:$0xff]  ;;  %v2936_v37 = vld [vmem:[#allocation46_spill] sm:$0xff]  ;;  %v2937_v39 = vld [vmem:[#allocation48_spill] sm:$0xff] }
 0x14a   :  { %v527_v46 = vpop.f32.mrf.mxu0  ;;  %v1089_v0 = vpack.c.bf16 %v1080_v58, %v1077_v55  ;;  %v2939_v42 = vld [vmem:[#allocation40_spill] sm:$0xff]  ;;  %v2940_v30 = vld [vmem:[#allocation49_spill] sm:$0xff]  ;;  %v2984_v60 = vld [vmem:[#allocation87_spill] sm:$0xff] }
 0x14b   :  { %1097 = vmatpush1.bf16.msra.mxu1 %v2066_v4  ;;  %v604_v2 = vpack.c.bf16 %v598_v49, %v596_v52  ;;  %1158 = vmatpush1.bf16.msra.mxu0 %v2091_v13  ;;  %v587_v51 = vadd.f32 %v586_v9, %v526_v34  ;;  %v599_v12 = vmax.f32 %v585_v32, 0.0  ;;  %v1071_v13 = vld [vmem:[#allocation5 + $0x8] sm:$0xff]  ;;  %v2928_v9 = vld [vmem:[#allocation38_spill] sm:$0xff]  ;;  %v2943_v46 = vld [vmem:[#allocation43_spill] sm:$0xff] }
 0x14c   :  { %1098 = vmatprep.subr.bf16.mxu1 %v2069_v5  ;;  %1159 = vmatprep.subr.bf16.mxu0 %v2100_v16  ;;  %v528_v3 = vpop.f32.mrf.mxu0  ;;  %v1074_v16 = vld [vmem:[#allocation5 + $0x20] sm:$0xff]  ;;  %v2938_v52 = vld [vmem:[#allocation37_spill] sm:$0xff] }
 0x14d   :  { %990 = vmatprep.mubr.bf16.mxu1 %v604_v2  ;;  %1051 = vmatprep.mubr.bf16.mxu0 %v604_v2  ;;  %v600_v10 = vmax.f32 %v587_v51, 0.0  ;;  %v605_v5 = vpack.c.bf16 %v599_v12, %v599_v12  ;;  %v2941_v47 = vld [vmem:[#allocation52_spill] sm:$0xff]  ;;  %v1076_v49 = vld [vmem:[#allocation5 + $0x30] sm:$0xff]  ;;  %v2945_v51 = vld [vmem:[#allocation55_spill] sm:$0xff] }
 0x14e   :  { %991 = vmatmul.mubr.bf16.gmra.mxu1 %v603_v54  ;;  %1052 = vmatmul.mubr.bf16.gmra.mxu0 %v603_v54  ;;  %v1079_v34 = vld [vmem:[#allocation5 + $0x48] sm:$0xff]  ;;  %v2942_v54 = vld [vmem:[#allocation42_spill] sm:$0xff] }
 0x14f   :  { %1099 = vmatpush1.bf16.msra.mxu1 %v2072_v6  ;;  %1160 = vmatpush1.bf16.msra.mxu0 %v2103_v17  ;;  %v606_v4 = vpack.c.bf16 %v600_v10, %v600_v10  ;;  %v1086_v6 = vpack.c.bf16 %v1074_v16, %v1071_v13  ;;  %v1078_v17 = vld [vmem:[#allocation5 + $0x40] sm:$0xff]  ;;  %v1083_v32 = vld [vmem:[#allocation5 + $0x68] sm:$0xff]  ;;  %v1088_v3 = vpack.c.bf16 %v1079_v34, %v1076_v49 }
 0x150   :  { %1100 = vmatprep.subr.bf16.mxu1 %v2075_v7  ;;  %1161 = vmatprep.subr.bf16.mxu0 %v2109_v19  ;;  %v2909_v7 = vmov 0   ;;  %v2911_v19 = vld [vmem:[#allocation16_spill] sm:$0xff]  ;;  %v2944_v2 = vld [vmem:[#allocation53_spill] sm:$0xff]  ;;  %v1092_v10 = vpack.c.bf16 %v1083_v32, %v1083_v32  ;;  %v2949_v13 = vld [vmem:[#allocation59_spill] sm:$0xff] }
 0x151   :  { %1000 = vmatprep.mubr.bf16.mxu1 %v606_v4  ;;  %1061 = vmatprep.mubr.bf16.mxu0 %v606_v4  ;;  %v2946_v12 = vld [vmem:[#allocation45_spill] sm:$0xff]  ;;  %v2947_v4 = vld [vmem:[#allocation47_spill] sm:$0xff]  ;;  %v2987_v55 = vld [vmem:[#allocation92_spill] sm:$0xff] }
 0x152   :  { %v1082_v16 = vld [vmem:[#allocation5 + $0x60] sm:$0xff]  ;;  %v193_v58 = vld [vmem:[%s2743_s5] sm:$0xf]  ;;  %s2009_s5 = smov [#allocation10]  }
 0x153   :  { %1101 = vmatpush1.bf16.msra.mxu1 %v2078_v8  ;;  %1162 = vmatpush1.bf16.msra.mxu0 %v2117_v22  ;;  %v1072_v8 = vld [vmem:[#allocation5 + $0x10] sm:$0xff]  ;;  %s1567_s22 = sshll.u32 %s2009_s5, 4  ;;  %s1568_s22 = int_to_ptr.vmem [resolvable:$true] %s1567_s22 }
 0x154   :  { %1102 = vmatprep.subr.bf16.mxu1 %v2085_v11  ;;  %1163 = vmatprep.subr.bf16.mxu0 %v2121_v23  ;;  %v1075_v11 = vld [vmem:[#allocation5 + $0x28] sm:$0xff]  ;;  %s1970_s23 = scalar_lea.vmem %s1568_s22, 16  ;;  %s1974_s24 = scalar_lea.vmem %s1568_s22, 32 }
 0x155   :  { %v2914_v23 = vld [vmem:[#allocation17_spill] sm:$0xff]  ;;  %p1971_p6 = scmp.ne.s32.totalorder %s1568_s22, %s1970_s23  ;;  %p1975_p7 = scmp.lt.s32.totalorder %s1568_s22, %s1568_s22 }
 0x156   :  { %1001 = vmatmul.mubr.bf16.gmra.mxu1 %v605_v5  ;;  %1062 = vmatmul.mubr.bf16.gmra.mxu0 %v605_v5  ;;  %v2948_v5 = vld [vmem:[#allocation57_spill] sm:$0xff]  ;;  %p1976_p8 = scmp.lt.s32.totalorder %s1974_s24, %s1970_s23 }
 0x157   :  { %1103 = vmatpush1.bf16.msra.mxu1 %v2094_v14  ;;  %1164 = vmatpush1.bf16.msra.mxu0 %v2127_v25  ;;  %v1087_v14 = vpack.c.bf16 %v1075_v11, %v1072_v8  ;;  %v2916_v25 = vld [vmem:[#allocation25_spill] sm:$0xff]  ;;  %v2953_v11 = vld [vmem:[#allocation63_spill] sm:$0xff] }
 0x158   :  { %1104 = vmatprep.subr.bf16.mxu1 %v2098_v15  ;;  %1165 = vmatprep.subr.bf16.mxu0 %v2133_v27  ;;  %v2910_v15 = vld [vmem:[#allocation15_spill] sm:$0xff]  ;;  %v2952_v8 = vld [vmem:[#allocation61_spill] sm:$0xff]  ;;  %p1977_p9 = por %p1976_p8, %p1975_p7 }
 0x159   :  { %1187 = vmatprep.mubr.bf16.mxu0 %v2909_v7  ;;  %1126 = vmatprep.mubr.bf16.mxu1 %v1086_v6  ;;  %v2918_v27 = vld [vmem:[#allocation19_spill] sm:$0xff]  ;;  %v2950_v6 = vld [vmem:[#allocation50_spill] sm:$0xff] }
 0x15a   :  { %p1978_p10 = pnand %p1977_p9, %p1971_p6 }
 0x15b   :  { %1105 = vmatpush1.bf16.msra.mxu1 %v2106_v18  ;;  %1166 = vmatpush1.bf16.msra.mxu0 %v2139_v29  ;;  %v1081_v18 = vld [vmem:[#allocation5 + $0x58] sm:$0xff]  ;;  %v2919_v29 = vld [vmem:[#allocation20_spill] sm:$0xff] }
 0x15c   :  { %1106 = vmatprep.subr.bf16.mxu1 %v2112_v20  ;;  %1167 = vmatprep.subr.bf16.mxu0 %v2145_v31  ;;  %v2912_v20 = vld [vmem:[#allocation21_spill] sm:$0xff]  ;;  %v1090_v22 = vpack.c.bf16 %v1081_v18, %v1078_v17  ;;  %v2955_v17 = vld [vmem:[#allocation56_spill] sm:$0xff] }
 0x15d   :  { %v2920_v31 = vld [vmem:[#allocation29_spill] sm:$0xff] }
 0x15e   :  { %v2956_v18 = vld [vmem:[#allocation65_spill] sm:$0xff] }
 0x15f   :  { %1107 = vmatpush1.bf16.msra.mxu1 %v2114_v21  ;;  %1168 = vmatpush1.bf16.msra.mxu0 %v2151_v35  ;;  %v2913_v21 = vld [vmem:[#allocation23_spill] sm:$0xff] }
 0x160   :  { %1108 = vmatprep.subr.bf16.mxu1 %v2124_v24  ;;  %1169 = vmatprep.subr.bf16.mxu0 %v2157_v38  ;;  %v2915_v24 = vld [vmem:[#allocation18_spill] sm:$0xff]  ;;  %v2921_v35 = vld [vmem:[#allocation31_spill] sm:$0xff] }
 0x163   :  { %1109 = vmatpush1.bf16.msra.mxu1 %v2130_v26  ;;  %1170 = vmatpush1.bf16.msra.mxu0 %v2162_v40  ;;  %v2917_v26 = vld [vmem:[#allocation27_spill] sm:$0xff]  ;;  %v2922_v40 = vld [vmem:[#allocation22_spill] sm:$0xff] }
 0x164   :  { %1110 = vmatprep.subr.bf16.mxu1 %v2136_v28  ;;  %1232 = vmatprep.subr.bf16.mxu0 %v2169_v44  ;;  %v1084_v28 = vld [vmem:[#allocation5 + $0x70] sm:$0xff]  ;;  %v2923_v44 = vld [vmem:[#allocation24_spill] sm:$0xff] }
 0x165   :  { %v1093_v38 = vpack.c.bf16 %v1084_v28, %v1084_v28  ;;  %v2966_v28 = vld [vmem:[#allocation66_spill] sm:$0xff] }
 0x166   :  { %1188 = vmatmul.mubr.bf16.vlgmr.msra.gmra.mxu0 %v1087_v14  ;;  %v1091_v14 = vpack.c.bf16 %v1082_v16, %v1082_v16 }
 0x167   :  { %1111 = vmatpush2.bf16.msra.mxu1 %v2910_v15  ;;  %1197 = vmatprep.mubr.bf16.mxu0 %v2909_v7  ;;  %v2954_v15 = vld [vmem:[#allocation54_spill] sm:$0xff] }
 0x168   :  { %1112 = vmatprep.subr.bf16.mxu1 %v2911_v19  ;;  %1233 = vmatpush1.bf16.msra.mxu0 %v2912_v20  ;;  %v2957_v19 = vld [vmem:[#allocation78_spill] sm:$0xff] }
 0x169   :  { %1234 = vmatprep.subr.bf16.mxu0 %v2913_v21  ;;  %v2958_v20 = vld [vmem:[#allocation58_spill] sm:$0xff]  ;;  %v2959_v21 = vld [vmem:[#allocation60_spill] sm:$0xff] }
 0x16b   :  { %1113 = vmatpush2.bf16.msra.mxu1 %v2914_v23  ;;  %v2961_v23 = vld [vmem:[#allocation81_spill] sm:$0xff] }
 0x16c   :  { %1114 = vmatprep.subr.bf16.mxu1 %v2915_v24  ;;  %1235 = vmatpush1.bf16.msra.mxu0 %v2916_v25  ;;  %v2962_v24 = vld [vmem:[#allocation62_spill] sm:$0xff]  ;;  %v2963_v25 = vld [vmem:[#allocation64_spill] sm:$0xff] }
 0x16d   :  { %1236 = vmatprep.subr.bf16.mxu0 %v2917_v26  ;;  %v2964_v26 = vld [vmem:[#allocation82_spill] sm:$0xff] }
 0x16e   :  { %1198 = vmatmul.mubr.bf16.gmra.mxu0 %v1090_v22  ;;  %v2960_v22 = vld [vmem:[#allocation77_spill] sm:$0xff] }
 0x16f   :  { %1115 = vmatpush2.bf16.msra.mxu1 %v2918_v27  ;;  %1207 = vmatprep.mubr.bf16.mxu0 %v2909_v7  ;;  %v2951_v7 = vld [vmem:[#allocation51_spill] sm:$0xff]  ;;  %v2965_v27 = vld [vmem:[#allocation85_spill] sm:$0xff] }
 0x170   :  { %1116 = vmatprep.subr.bf16.mxu1 %v2919_v29  ;;  %1237 = vmatpush1.bf16.msra.mxu0 %v2920_v31  ;;  %v2967_v29 = vld [vmem:[#allocation67_spill] sm:$0xff]  ;;  %v2968_v31 = vld [vmem:[#allocation86_spill] sm:$0xff] }
 0x171   :  { %1238 = vmatprep.subr.bf16.mxu0 %v2921_v35  ;;  %v2969_v35 = vld [vmem:[#allocation89_spill] sm:$0xff] }
 0x173   :  { %1117 = vmatpush2.bf16.msra.mxu1 %v2922_v40  ;;  %v2971_v40 = vld [vmem:[#allocation69_spill] sm:$0xff] }
 0x174   :  { %1118 = vmatprep.subr.bf16.mxu1 %v2923_v44  ;;  %1239 = vmatpush1.bf16.msra.mxu0 %v2924_v59  ;;  %v2972_v44 = vld [vmem:[#allocation90_spill] sm:$0xff] }
 0x175   :  { %1240 = vmatprep.subr.bf16.mxu0 %v2925_v33  ;;  %v2973_v59 = vld [vmem:[#allocation70_spill] sm:$0xff]  ;;  %v2974_v33 = vld [vmem:[#allocation71_spill] sm:$0xff] }
 0x176   :  { %1208 = vmatmul.mubr.bf16.gmra.mxu0 %v1093_v38  ;;  %v2970_v38 = vld [vmem:[#allocation68_spill] sm:$0xff] }
 0x177   :  { %1119 = vmatpush2.bf16.msra.mxu1 %v2926_v63  ;;  %v2975_v63 = vld [vmem:[#allocation72_spill] sm:$0xff] }
 0x178   :  { %1120 = vmatprep.subr.bf16.mxu1 %v2927_v61  ;;  %1241 = vmatpush1.bf16.msra.mxu0 %v2928_v9  ;;  %v2976_v61 = vld [vmem:[#allocation73_spill] sm:$0xff]  ;;  %v2977_v9 = vld [vmem:[#allocation74_spill] sm:$0xff] }
 0x179   :  { %1242 = vmatprep.subr.bf16.mxu0 %v2929_v36  ;;  %v2978_v36 = vld [vmem:[#allocation76_spill] sm:$0xff] }
 0x17b   :  { %1121 = vmatpush2.bf16.msra.mxu1 %v2930_v1  ;;  %v2979_v1 = vld [vmem:[#allocation75_spill] sm:$0xff] }
 0x17c   :  { %1122 = vmatprep.subr.bf16.mxu1 %v2931_v50  ;;  %1243 = vmatpush1.bf16.msra.mxu0 %v2932_v48  ;;  %v2980_v50 = vld [vmem:[#allocation79_spill] sm:$0xff]  ;;  %v2981_v48 = vld [vmem:[#allocation80_spill] sm:$0xff] }
 0x17d   :  { %1244 = vmatprep.subr.bf16.mxu0 %v2933_v62  ;;  %v2982_v62 = vld [vmem:[#allocation83_spill] sm:$0xff] }
 0x17f   :  { %1123 = vmatpush2.bf16.msra.mxu1 %v2934_v45  ;;  %v2983_v45 = vld [vmem:[#allocation84_spill] sm:$0xff] }
 0x180   :  { %1124 = vmatprep.subr.bf16.mxu1 %v2935_v41  ;;  %1245 = vmatpush1.bf16.msra.mxu0 %v2936_v37  ;;  %v2986_v41 = vld [vmem:[#allocation91_spill] sm:$0xff]  ;;  %v2988_v37 = vld [vmem:[#allocation93_spill] sm:$0xff] }
 0x181   :  { %1246 = vmatprep.subr.bf16.mxu0 %v2937_v39  ;;  %v618_v39 = vsub.s32 2, %v2988_v37 }
 0x183   :  { %1125 = vmatpush2.bf16.msra.mxu1 %v2938_v52  ;;  %v2550_v49 = vrot.slane %v193_v58, %v618_v39 }
 0x184   :  { %1293 = vmatprep.subr.bf16.mxu1 %v2939_v42  ;;  %1247 = vmatpush1.bf16.msra.mxu0 %v2940_v30  ;;  %v2990_v42 = vsub.s32 1, %v2988_v37 }
 0x185   :  { %1248 = vmatprep.subr.bf16.mxu0 %v2941_v47 }
 0x186   :  { %1127 = vmatmul.mubr.bf16.vlgmr.msra.gmra.mxu1 %v1085_v53  ;;  %v2989_v53 = vsub.s32 0, %v2988_v37  ;;  %v2548_v30 = vrot.slane %v193_v58, %v2990_v42 }
 0x187   :  { %1136 = vmatprep.mubr.bf16.mxu1 %v1089_v0  ;;  %1294 = vmatpush1.bf16.msra.mxu1 %v2942_v54  ;;  %v622_v0 = vsub.s32 3, %v2988_v37 }
 0x188   :  { %1295 = vmatprep.subr.bf16.mxu1 %v2943_v46  ;;  %1249 = vmatpush2.bf16.msra.mxu0 %v2944_v2  ;;  %v2543_v52 = vrot.slane %v193_v58, %v2989_v53 }
 0x189   :  { %1250 = vmatprep.subr.bf16.mxu0 %v2945_v51  ;;  %v2555_v46 = vrot.slane %v193_v58, %v622_v0 }
 0x18b   :  { %1296 = vmatpush1.bf16.msra.mxu1 %v2946_v12 }
 0x18c   :  { %1297 = vmatprep.subr.bf16.mxu1 %v2947_v4  ;;  %1251 = vmatpush2.bf16.msra.mxu0 %v2948_v5 }
 0x18d   :  { %1252 = vmatprep.subr.bf16.mxu0 %v2949_v13 }
 0x18e   :  { %1137 = vmatmul.mubr.bf16.gmra.mxu1 %v1088_v3 }
 0x18f   :  { %1146 = vmatprep.mubr.bf16.mxu1 %v1092_v10  ;;  %1298 = vmatpush1.bf16.msra.mxu1 %v2950_v6 }
 0x190   :  { %1299 = vmatprep.subr.bf16.mxu1 %v2951_v7  ;;  %1253 = vmatpush2.bf16.msra.mxu0 %v2952_v8 }
 0x191   :  { %1254 = vmatprep.subr.bf16.mxu0 %v2953_v11 }
 0x193   :  { %1300 = vmatpush1.bf16.msra.mxu1 %v2954_v15 }
 0x194   :  { %1301 = vmatprep.subr.bf16.mxu1 %v2955_v17  ;;  %1255 = vmatpush2.bf16.msra.mxu0 %v2956_v18 }
 0x195   :  { %1256 = vmatprep.subr.bf16.mxu0 %v2957_v19 }
 0x196   :  { %1147 = vmatmul.mubr.bf16.gmra.mxu1 %v1091_v14 }
 0x197   :  { %1302 = vmatpush1.bf16.msra.mxu1 %v2958_v20 }
 0x198   :  { %1303 = vmatprep.subr.bf16.mxu1 %v2959_v21  ;;  %1257 = vmatpush2.bf16.msra.mxu0 %v2960_v22 }
 0x199   :  { %1258 = vmatprep.subr.bf16.mxu0 %v2961_v23 }
 0x19b   :  { %1304 = vmatpush1.bf16.msra.mxu1 %v2962_v24 }
 0x19c   :  { %1305 = vmatprep.subr.bf16.mxu1 %v2963_v25  ;;  %1259 = vmatpush2.bf16.msra.mxu0 %v2964_v26 }
 0x19d   :  { %1260 = vmatprep.subr.bf16.mxu0 %v2965_v27 }
 0x19f   :  { %1306 = vmatpush1.bf16.msra.mxu1 %v2966_v28 }
 0x1a0   :  { %1307 = vmatprep.subr.bf16.mxu1 %v2967_v29  ;;  %1261 = vmatpush2.bf16.msra.mxu0 %v2968_v31 }
 0x1a1   :  { %1262 = vmatprep.subr.bf16.mxu0 %v2969_v35 }
 0x1a3   :  { %1308 = vmatpush1.bf16.msra.mxu1 %v2970_v38 }
 0x1a4   :  { %1309 = vmatprep.subr.bf16.mxu1 %v2971_v40  ;;  %1263 = vmatpush2.bf16.msra.mxu0 %v2972_v44 }
 0x1a7   :  { %1310 = vmatpush2.bf16.msra.mxu1 %v2973_v59 }
 0x1a8   :  { %1311 = vmatprep.subr.bf16.mxu1 %v2974_v33 }
 0x1ab   :  { %1312 = vmatpush2.bf16.msra.mxu1 %v2975_v63 }
 0x1ac   :  { %1313 = vmatprep.subr.bf16.mxu1 %v2976_v61 }
 0x1af   :  { %1314 = vmatpush2.bf16.msra.mxu1 %v2977_v9 }
 0x1b0   :  { %1315 = vmatprep.subr.bf16.mxu1 %v2978_v36 }
 0x1b3   :  { %1316 = vmatpush2.bf16.msra.mxu1 %v2979_v1 }
 0x1b4   :  { %1317 = vmatprep.subr.bf16.mxu1 %v2980_v50 }
 0x1b7   :  { %1318 = vmatpush2.bf16.msra.mxu1 %v2981_v48 }
 0x1b8   :  { %1319 = vmatprep.subr.bf16.mxu1 %v2982_v62 }
 0x1bb   :  { %1320 = vmatpush2.bf16.msra.mxu1 %v2983_v45 }
 0x1bc   :  { %1321 = vmatprep.subr.bf16.mxu1 %v2984_v60 }
 0x1bf   :  { %1322 = vmatpush2.bf16.msra.mxu1 %v2985_v43 }
 0x1c0   :  { %1323 = vmatprep.subr.bf16.mxu1 %v2986_v41 }
 0x1c3   :  { %1324 = vmatpush2.bf16.msra.mxu1 %v2987_v55 }
 0x206   :  { %v982_v47 = vpop.f32.mrf.mxu1  ;;  %v1043_v34 = vpop.f32.mrf.mxu0 }
 0x207   :  { %v2553_v54 = vadd.f32 %v982_v47, %v2543_v52  ;;  %v2561_v3 = vadd.f32 %v1043_v34, %v2550_v49 }
 0x208   :  { %v984_v32 = vpop.f32.mrf.mxu1  ;;  %v1045_v2 = vpop.f32.mrf.mxu0 }
 0x209   :  { %v2558_v51 = vadd.f32 %v984_v32, %v2548_v30  ;;  %v1399_v13 = vmul.f32 %v2553_v54, %v2553_v54  ;;  %v2571_v16 = vadd.f32 %v1045_v2, %v2555_v46  ;;  %v1401_v14 = vmul.f32 %v2561_v3, %v2561_v3 }
 0x20a   :  { %v986_v10 = vpop.f32.mrf.mxu1  ;;  %v1047_v12 = vpop.f32.mrf.mxu0 }
 0x20b   :  { %v1400_v4 = vmul.f32 %v2558_v51, %v2558_v51  ;;  %v2566_v5 = vadd.f32 %v986_v10, %v2543_v52  ;;  %v2574_v8 = vadd.f32 %v1047_v12, %v2550_v49  ;;  %v1402_v24 = vmul.f32 %v2571_v16, %v2571_v16 }
 0x20c   :  { %v988_v6 = vpop.f32.mrf.mxu1  ;;  %v1049_v7 = vpop.f32.mrf.mxu0 }
 0x20d   :  { %v2577_v11 = vadd.f32 %v988_v6, %v2548_v30  ;;  %v2582_v15 = vadd.f32 %v1049_v7, %v2555_v46  ;;  %v1419_v17 = vadd.f32 %v1400_v4, %v1399_v13  ;;  %v1403_v20 = vmul.f32 %v2566_v5, %v2566_v5 }
 0x20e   :  { %v992_v18 = vpop.f32.mrf.mxu1  ;;  %v1053_v19 = vpop.f32.mrf.mxu0  ;;  %v1405_v28 = vmul.f32 %v2574_v8, %v2574_v8 }
 0x20f   :  { %v1404_v21 = vmul.f32 %v2577_v11, %v2577_v11  ;;  %v2589_v22 = vadd.f32 %v992_v18, %v2543_v52  ;;  %v2592_v23 = vadd.f32 %v1053_v19, %v2550_v49  ;;  %v1420_v25 = vadd.f32 %v1419_v17, %v1401_v14 }
 0x210   :  { %v994_v26 = vpop.f32.mrf.mxu1  ;;  %v1055_v27 = vpop.f32.mrf.mxu0  ;;  %v1406_v38 = vmul.f32 %v2582_v15, %v2582_v15 }
 0x211   :  { %v1424_v29 = vadd.f32 %v1404_v21, %v1403_v20  ;;  %v1407_v31 = vmul.f32 %v2589_v22, %v2589_v22  ;;  %v2601_v35 = vadd.f32 %v994_v26, %v2548_v30  ;;  %v1421_v40 = vadd.f32 %v1420_v25, %v1402_v24 }
 0x212   :  { %v996_v44 = vpop.f32.mrf.mxu1  ;;  %v1409_v59 = vmul.f32 %v2592_v23, %v2592_v23  ;;  %v2608_v33 = vadd.f32 %v1055_v27, %v2555_v46  ;;  %v1057_v63 = vpop.f32.mrf.mxu0 }
 0x213   :  { %v1425_v61 = vadd.f32 %v1424_v29, %v1405_v28  ;;  %v1408_v9 = vmul.f32 %v2601_v35, %v2601_v35  ;;  %v2613_v36 = vadd.f32 %v996_v44, %v2543_v52  ;;  %v2616_v1 = vadd.f32 %v1057_v63, %v2550_v49  ;;  %1422 = vadd.xlane.f32.xlu0 %v1421_v40 }
 0x214   :  { %v998_v50 = vpop.f32.mrf.mxu1  ;;  %v1410_v48 = vmul.f32 %v2608_v33, %v2608_v33  ;;  %v1059_v62 = vpop.f32.mrf.mxu0 }
 0x215   :  { %v1426_v45 = vadd.f32 %v1425_v61, %v1406_v38  ;;  %v1429_v60 = vadd.f32 %v1408_v9, %v1407_v31  ;;  %v1411_v43 = vmul.f32 %v2613_v36, %v2613_v36  ;;  %v2623_v41 = vadd.f32 %v998_v50, %v2548_v30 }
 0x216   :  { %v2626_v55 = vadd.f32 %v1059_v62, %v2555_v46  ;;  %v1002_v58 = vpop.f32.mrf.mxu1  ;;  %v1063_v39 = vpop.f32.mrf.mxu0  ;;  %v1413_v0 = vmul.f32 %v2616_v1, %v2616_v1 }
 0x217   :  { %v1412_v53 = vmul.f32 %v2623_v41, %v2623_v41  ;;  %v1430_v42 = vadd.f32 %v1429_v60, %v1409_v59  ;;  %v2633_v47 = vadd.f32 %v1002_v58, %v2543_v52  ;;  %1427 = vadd.xlane.f32.xlu0 %v1426_v45  ;;  %v2636_v34 = vadd.f32 %v1063_v39, %v2550_v49 }
 0x218   :  { %v1004_v32 = vpop.f32.mrf.mxu1  ;;  %v1065_v2 = vpop.f32.mrf.mxu0  ;;  %v1414_v12 = vmul.f32 %v2626_v55, %v2626_v55 }
 0x219   :  { %v1434_v10 = vadd.f32 %v1412_v53, %v1411_v43  ;;  %v1431_v4 = vadd.f32 %v1430_v42, %v1410_v48  ;;  %v1415_v13 = vmul.f32 %v2633_v47, %v2633_v47  ;;  %v2643_v6 = vadd.f32 %v1004_v32, %v2548_v30 }
 0x21a   :  { %v2646_v7 = vadd.f32 %v1065_v2, %v2555_v46  ;;  %v1006_v14 = vpop.f32.mrf.mxu1  ;;  %v1067_v17 = vpop.f32.mrf.mxu0  ;;  %v1417_v19 = vmul.f32 %v2636_v34, %v2636_v34 }
 0x21b   :  { %v1435_v18 = vadd.f32 %v1434_v10, %v1413_v0  ;;  %1432 = vadd.xlane.f32.xlu0 %v1431_v4  ;;  %v1416_v20 = vmul.f32 %v2643_v6, %v2643_v6 }
 0x21c   :  { %v1007_v21 = vpop.f32.mrf.mxu1  ;;  %v1068_v24 = vpop.f32.mrf.mxu0  ;;  %v1418_v27 = vmul.f32 %v2646_v7, %v2646_v7 }
 0x21d   :  { %v1436_v25 = vadd.f32 %v1435_v18, %v1414_v12  ;;  %v1439_v26 = vadd.f32 %v1416_v20, %v1415_v13 }
 0x21f   :  { %1437 = vadd.xlane.f32.xlu0 %v1436_v25  ;;  %v1440_v28 = vadd.f32 %v1439_v26, %v1417_v19 }
 0x221   :  { %v1441_v29 = vadd.f32 %v1440_v28, %v1418_v27 }
 0x223   :  { %1442 = vadd.xlane.f32.xlu0 %v1441_v29 }
 0x226   :  { %v1189_v31 = vpop.f32.mrf.mxu0 }
 0x228   :  { %v1191_v38 = vpop.f32.mrf.mxu0 }
 0x22a   :  { %v1193_v40 = vpop.f32.mrf.mxu0 }
 0x22c   :  { %v1195_v44 = vpop.f32.mrf.mxu0 }
 0x22e   :  { %v1199_v59 = vpop.f32.mrf.mxu0 }
 0x230   :  { %v1201_v63 = vpop.f32.mrf.mxu0 }
 0x232   :  { %v1203_v61 = vpop.f32.mrf.mxu0 }
 0x234   :  { %v1205_v9 = vpop.f32.mrf.mxu0 }
 0x236   :  { %v1209_v50 = vpop.f32.mrf.mxu0 }
 0x238   :  { %v1211_v48 = vpop.f32.mrf.mxu0 }
 0x23a   :  { %v1213_v62 = vpop.f32.mrf.mxu0 }
 0x23c   :  { %v1214_v45 = vpop.f32.mrf.mxu0 }
 0x246   :  { %v1128_v60 = vpop.f32.mrf.mxu1 }
 0x247   :  { %v1129_v39 = vadd.f32 %v1128_v60, %v2412_v56 }
 0x248   :  { %v1130_v43 = vpop.f32.mrf.mxu1 }
 0x249   :  { %v1131_v58 = vadd.f32 %v1130_v43, %v2408_v57  ;;  %v1190_v12 = vadd.f32 %v1189_v31, %v1129_v39 }
 0x24a   :  { %v1132_v53 = vpop.f32.mrf.mxu1 }
 0x24b   :  { %v1133_v0 = vadd.f32 %v1132_v53, %v2412_v56  ;;  %v1192_v32 = vadd.f32 %v1191_v38, %v1131_v58  ;;  %v1216_v21 = vmax.f32 %v1190_v12, 0.0 }
 0x24c   :  { %v1134_v42 = vpop.f32.mrf.mxu1 }
 0x24d   :  { %v1194_v2 = vadd.f32 %v1193_v40, %v1133_v0  ;;  %v1135_v10 = vadd.f32 %v1134_v42, %v2408_v57  ;;  %v1217_v18 = vmax.f32 %v1192_v32, 0.0 }
 0x24e   :  { %v1138_v4 = vpop.f32.mrf.mxu1 }
 0x24f   :  { %v1196_v13 = vadd.f32 %v1195_v44, %v1135_v10  ;;  %v1218_v14 = vmax.f32 %v1194_v2, 0.0  ;;  %v1139_v24 = vadd.f32 %v1138_v4, %v2412_v56 }
 0x250   :  { %v1140_v17 = vpop.f32.mrf.mxu1 }
 0x251   :  { %v1219_v19 = vmax.f32 %v1196_v13, 0.0  ;;  %v1141_v20 = vadd.f32 %v1140_v17, %v2408_v57  ;;  %v1226_v28 = vpack.c.bf16 %v1218_v14, %v1216_v21  ;;  %v1200_v44 = vadd.f32 %v1199_v59, %v1139_v24 }
 0x252   :  { %v1142_v25 = vpop.f32.mrf.mxu1 }
 0x253   :  { %v1143_v26 = vadd.f32 %v1142_v25, %v2412_v56  ;;  %v1227_v27 = vpack.c.bf16 %v1219_v19, %v1217_v18  ;;  %v1202_v38 = vadd.f32 %v1201_v63, %v1141_v20  ;;  %v1220_v42 = vmax.f32 %v1200_v44, 0.0 }
 0x254   :  { %v1144_v29 = vpop.f32.mrf.mxu1 }
 0x255   :  { %v1204_v40 = vadd.f32 %v1203_v61, %v1143_v26  ;;  %v1145_v31 = vadd.f32 %v1144_v29, %v2408_v57  ;;  %1264 = vmatprep.mubr.bf16.mxu0 %v1227_v27  ;;  %1325 = vmatprep.mubr.bf16.mxu1 %v1227_v27  ;;  %v1221_v39 = vmax.f32 %v1202_v38, 0.0 }
 0x256   :  { %v1148_v62 = vpop.f32.mrf.mxu1  ;;  %1265 = vmatmul.mubr.bf16.vlgmr.msra.gmra.mxu0 %v1226_v28  ;;  %1326 = vmatmul.mubr.bf16.vlgmr.msra.gmra.mxu1 %v1226_v28 }
 0x257   :  { %v1206_v45 = vadd.f32 %v1205_v9, %v1145_v31  ;;  %v1222_v60 = vmax.f32 %v1204_v40, 0.0  ;;  %v1149_v43 = vadd.f32 %v1148_v62, %v2412_v56 }
 0x258   :  { %v1150_v58 = vpop.f32.mrf.mxu1 }
 0x259   :  { %v1223_v53 = vmax.f32 %v1206_v45, 0.0  ;;  %v1151_v0 = vadd.f32 %v1150_v58, %v2408_v57  ;;  %v1210_v2 = vadd.f32 %v1209_v50, %v1149_v43  ;;  %v1228_v12 = vpack.c.bf16 %v1222_v60, %v1220_v42 }
 0x25a   :  { %v1152_v63 = vpop.f32.mrf.mxu1 }
 0x25b   :  { %v1212_v61 = vadd.f32 %v1211_v48, %v1151_v0  ;;  %v1229_v32 = vpack.c.bf16 %v1223_v53, %v1221_v39  ;;  %v1224_v4 = vmax.f32 %v1210_v2, 0.0 }
 0x25c   :  { %v1153_v10 = vpop.f32.mrf.mxu1 }
 0x25d   :  { %v1225_v59 = vmax.f32 %v1212_v61, 0.0  ;;  %1274 = vmatprep.mubr.bf16.mxu0 %v1229_v32  ;;  %1335 = vmatprep.mubr.bf16.mxu1 %v1229_v32  ;;  %v1230_v56 = vpack.c.bf16 %v1224_v4, %v1224_v4 }
 0x25e   :  { %1275 = vmatmul.mubr.bf16.gmra.mxu0 %v1228_v12  ;;  %1336 = vmatmul.mubr.bf16.gmra.mxu1 %v1228_v12 }
 0x25f   :  { %v1231_v9 = vpack.c.bf16 %v1225_v59, %v1225_v59 }
 0x261   :  { %1284 = vmatprep.mubr.bf16.mxu0 %v1231_v9  ;;  %1345 = vmatprep.mubr.bf16.mxu1 %v1231_v9 }
 0x266   :  { %1285 = vmatmul.mubr.bf16.gmra.mxu0 %v1230_v56  ;;  %1346 = vmatmul.mubr.bf16.gmra.mxu1 %v1230_v56 }
 0x316   :  { %v1266_v57 = vpop.f32.mrf.mxu0  ;;  %v1327_v13 = vpop.f32.mrf.mxu1 }
 0x317   :  { %v1267_v50 = vadd.f32 %v1266_v57, %v2543_v52  ;;  %v1328_v28 = vadd.f32 %v1327_v13, %v2550_v49 }
 0x318   :  { %v1268_v14 = vpop.f32.mrf.mxu0  ;;  %v1329_v48 = vpop.f32.mrf.mxu1 }
 0x319   :  { %v1269_v17 = vadd.f32 %v1268_v14, %v2548_v30  ;;  %v1354_v26 = vmul.f32 %v1267_v50, %v2553_v54  ;;  %v1444_v27 = vmul.f32 %v1267_v50, %v1267_v50  ;;  %v1330_v29 = vadd.f32 %v1329_v48, %v2555_v46 }
 0x31a   :  { %v1270_v18 = vpop.f32.mrf.mxu0  ;;  %v1331_v19 = vpop.f32.mrf.mxu1  ;;  %v1356_v39 = vmul.f32 %v1328_v28, %v2561_v3  ;;  %v1446_v53 = vmul.f32 %v1328_v28, %v1328_v28 }
 0x31b   :  { %v1355_v20 = vmul.f32 %v1269_v17, %v2558_v51  ;;  %v1445_v21 = vmul.f32 %v1269_v17, %v1269_v17  ;;  %v2671_v38 = vadd.f32 %v1270_v18, %v2543_v52  ;;  %v2674_v40 = vadd.f32 %v1331_v19, %v2550_v49 }
 0x31c   :  { %v1272_v24 = vpop.f32.mrf.mxu0  ;;  %v1333_v25 = vpop.f32.mrf.mxu1  ;;  %v1357_v0 = vmul.f32 %v1330_v29, %v2571_v16  ;;  %v1447_v12 = vmul.f32 %v1330_v29, %v1330_v29 }
 0x31d   :  { %v2677_v31 = vadd.f32 %v1272_v24, %v2548_v30  ;;  %v1374_v62 = vadd.f32 %v1355_v20, %v1354_v26  ;;  %v1464_v54 = vadd.f32 %v1445_v21, %v1444_v27  ;;  %v1448_v63 = vmul.f32 %v2671_v38, %v2671_v38 }
 0x31e   :  { %v1276_v51 = vpop.f32.mrf.mxu0  ;;  %v1337_v44 = vpop.f32.mrf.mxu1  ;;  %v1450_v61 = vmul.f32 %v2674_v40, %v2674_v40  ;;  %v2691_v59 = vadd.f32 %v1333_v25, %v2555_v46 }
 0x31f   :  { %v1277_v45 = vadd.f32 %v1276_v51, %v2543_v52  ;;  %v1449_v60 = vmul.f32 %v2677_v31, %v2677_v31  ;;  %v1338_v42 = vadd.f32 %v1337_v44, %v2550_v49  ;;  %v1465_v9 = vadd.f32 %v1464_v54, %v1446_v53 }
 0x320   :  { %v1278_v43 = vpop.f32.mrf.mxu0  ;;  %v1339_v58 = vpop.f32.mrf.mxu1  ;;  %v1375_v16 = vadd.f32 %v1374_v62, %v1356_v39  ;;  %v1451_v62 = vmul.f32 %v2691_v59, %v2691_v59 }
 0x321   :  { %v1279_v32 = vadd.f32 %v1278_v43, %v2548_v30  ;;  %v1362_v3 = vmul.f32 %v1277_v45, %v2589_v22  ;;  %v1469_v4 = vadd.f32 %v1449_v60, %v1448_v63  ;;  %v1452_v56 = vmul.f32 %v1277_v45, %v1277_v45 }
 0x322   :  { %v1280_v2 = vpop.f32.mrf.mxu0  ;;  %v1341_v10 = vpop.f32.mrf.mxu1  ;;  %v1364_v50 = vmul.f32 %v1338_v42, %v2592_v23  ;;  %v1340_v17 = vadd.f32 %v1339_v58, %v2555_v46  ;;  %v1466_v21 = vadd.f32 %v1465_v9, %v1447_v12  ;;  %v1376_v24 = vadd.f32 %v1375_v16, %v1357_v0 }
 0x323   :  { %v1363_v57 = vmul.f32 %v1279_v32, %v2601_v35  ;;  %v1453_v13 = vmul.f32 %v1279_v32, %v1279_v32  ;;  %v1281_v18 = vadd.f32 %v1280_v2, %v2543_v52  ;;  %v2699_v19 = vadd.f32 %v1341_v10, %v2550_v49 }
 0x324   :  { %v1282_v14 = vpop.f32.mrf.mxu0  ;;  %v1343_v48 = vpop.f32.mrf.mxu1  ;;  %v1454_v27 = vmul.f32 %v1338_v42, %v1338_v42  ;;  %1467 = vadd.xlane.f32.xlu1 %v1466_v21  ;;  %1377 = vadd.xlane.f32.xlu0 %v1376_v24  ;;  %v1470_v28 = vadd.f32 %v1469_v4, %v1450_v61  ;;  %v1365_v43 = vmul.f32 %v1340_v17, %v2608_v33 }
 0x325   :  { %v1384_v20 = vadd.f32 %v1363_v57, %v1362_v3  ;;  %v1474_v22 = vadd.f32 %v1453_v13, %v1452_v56  ;;  %v1283_v35 = vadd.f32 %v1282_v14, %v2548_v30  ;;  %v1456_v45 = vmul.f32 %v1281_v18, %v1281_v18 }
 0x326   :  { %v1286_v25 = vpop.f32.mrf.mxu0  ;;  %v1347_v26 = vpop.f32.mrf.mxu1  ;;  %v1455_v58 = vmul.f32 %v1340_v17, %v1340_v17  ;;  %v1458_v39 = vmul.f32 %v2699_v19, %v2699_v19  ;;  %v1344_v53 = vadd.f32 %v1343_v48, %v2555_v46  ;;  %v1471_v61 = vadd.f32 %v1470_v28, %v1451_v62 }
 0x327   :  { %v1287_v23 = vadd.f32 %v1286_v25, %v2543_v52  ;;  %v1385_v44 = vadd.f32 %v1384_v20, %v1364_v50  ;;  %v1457_v54 = vmul.f32 %v1283_v35, %v1283_v35  ;;  %v1475_v60 = vadd.f32 %v1474_v22, %v1454_v27 }
 0x328   :  { %v1288_v29 = vpop.f32.mrf.mxu0  ;;  %v1349_v51 = vpop.f32.mrf.mxu1  ;;  %v1348_v63 = vadd.f32 %v1347_v26, %v2550_v49  ;;  %1472 = vadd.xlane.f32.xlu1 %v1471_v61  ;;  %v1359_v49 = vmul.f32 %v2677_v31, %v2577_v11  ;;  %v1459_v13 = vmul.f32 %v1344_v53, %v1344_v53  ;;  %v1367_v21 = vmul.f32 %v1283_v35, %v2623_v41 }
 0x329   :  { %v1479_v42 = vadd.f32 %v1457_v54, %v1456_v45  ;;  %v1289_v32 = vadd.f32 %v1288_v29, %v2548_v30  ;;  %v1370_v2 = vmul.f32 %v1287_v23, %v2633_v47  ;;  %v1460_v10 = vmul.f32 %v1287_v23, %v1287_v23 }
 0x32a   :  { %v1290_v0 = vpop.f32.mrf.mxu0  ;;  %v1351_v52 = vpop.f32.mrf.mxu1  ;;  %v1350_v12 = vadd.f32 %v1349_v51, %v2555_v46  ;;  %v1386_v33 = vadd.f32 %v1385_v44, %v1365_v43  ;;  %v1476_v56 = vadd.f32 %v1475_v60, %v1455_v58  ;;  %v1372_v30 = vmul.f32 %v1348_v63, %v2636_v34 }
 0x32b   :  { %v1371_v16 = vmul.f32 %v1289_v32, %v2643_v6  ;;  %v1461_v4 = vmul.f32 %v1289_v32, %v1289_v32  ;;  %v1480_v57 = vadd.f32 %v1479_v42, %v1458_v39  ;;  %v1462_v47 = vmul.f32 %v1348_v63, %v1348_v63 }
 0x32c   :  { %v1291_v3 = vpop.f32.mrf.mxu0  ;;  %v1352_v9 = vpop.f32.mrf.mxu1  ;;  %1387 = vadd.xlane.f32.xlu0 %v1386_v33  ;;  %v1358_v46 = vmul.f32 %v2671_v38, %v2566_v5  ;;  %v1373_v50 = vmul.f32 %v1350_v12, %v2646_v7  ;;  %1477 = vadd.xlane.f32.xlu1 %v1476_v56  ;;  %v1463_v11 = vmul.f32 %v1350_v12, %v1350_v12  ;;  %v2991_v42 = vlaneseq }
 0x32d   :  { %v1394_v14 = vadd.f32 %v1371_v16, %v1370_v2  ;;  %v1484_v48 = vadd.f32 %v1461_v4, %v1460_v10  ;;  %v1481_v6 = vadd.f32 %v1480_v57, %v1459_v13  ;;  %v1360_v34 = vmul.f32 %v2674_v40, %v2574_v8 }
 0x32e   :  { %v1379_v22 = vadd.f32 %v1359_v49, %v1358_v46  ;;  %v1366_v24 = vmul.f32 %v1281_v18, %v2613_v36  ;;  %v1361_v7 = vmul.f32 %v2691_v59, %v2582_v15  ;;  %v1368_v26 = vmul.f32 %v2699_v19, %v2616_v1  ;;  %v1423_v36 = vpop.xlane.xlu0 %1422 }
 0x32f   :  { %v1485_v17 = vadd.f32 %v1484_v48, %v1462_v47  ;;  %v1395_v20 = vadd.f32 %v1394_v14, %v1372_v30  ;;  %v1369_v35 = vmul.f32 %v1344_v53, %v2626_v55  ;;  %v1489_v1 = vmax.f32 %v1423_v36, 1e-24 }
 0x330   :  { %1482 = vadd.xlane.f32.xlu1 %v1481_v6  ;;  %v1389_v5 = vadd.f32 %v1367_v21, %v1366_v24  ;;  %v1380_v38 = vadd.f32 %v1379_v22, %v1360_v34  ;;  %v1525_v63 = vand.u32 127, %v2991_v42 }
 0x331   :  { %v1396_v31 = vadd.f32 %v1395_v20, %v1373_v50  ;;  %v1486_v25 = vadd.f32 %v1485_v17, %v1463_v11 }
 0x332   :  { %v1381_v41 = vadd.f32 %v1380_v38, %v1361_v7  ;;  %v1390_v27 = vadd.f32 %v1389_v5, %v1368_v26  ;;  %v1428_v40 = vpop.xlane.xlu0 %1427  ;;  %v1530_v10 = vadd.s32 4294967288, %v1525_v63  ;;  %v1537_v16 = vadd.s32 4294967280, %v1525_v63 }
 0x333   :  { %1397 = vadd.xlane.f32.xlu0 %v1396_v31  ;;  %v1490_v28 = vmax.f32 %v1428_v40, 1e-24  ;;  %v1544_v56 = vadd.s32 4294967272, %v1525_v63  ;;  %v1551_v46 = vadd.s32 4294967264, %v1525_v63  ;;  %v1528_v6 = vsub.s32 %v1525_v63, %v2988_v37 }
 0x334   :  { %1487 = vadd.xlane.f32.xlu1 %v1486_v25  ;;  %v1391_v8 = vadd.f32 %v1390_v27, %v1369_v35  ;;  %v1533_v30 = vsub.s32 %v1530_v10, %v2988_v37  ;;  %v1540_v14 = vsub.s32 %v1537_v16, %v2988_v37 }
 0x335   :  { %1870 = vrsqrt.f32 %v1490_v28  ;;  %v1547_v20 = vsub.s32 %v1544_v56, %v2988_v37  ;;  %v1554_v5 = vsub.s32 %v1551_v46, %v2988_v37 }
 0x336   :  { %v1433_v23 = vpop.xlane.xlu0 %1432 }
 0x337   :  { %v1491_v51 = vmax.f32 %v1433_v23, 1e-24 }
 0x338   :  { %1382 = vadd.xlane.f32.xlu1 %v1381_v41 }
 0x33a   :  { %v1438_v59 = vpop.xlane.xlu0 %1437 }
 0x33b   :  { %v1492_v55 = vmax.f32 %v1438_v59, 1e-24 }
 0x33c   :  { %1392 = vadd.xlane.f32.xlu1 %v1391_v8 }
 0x33e   :  { %v1443_v45 = vpop.xlane.xlu0 %1442 }
 0x33f   :  { %v1493_v43 = vmax.f32 %v1443_v45, 1e-24 }
 0x342   :  { %v1871_v53 = vpop.eup %1870 }
 0x3ad   :  { %v1468_v18 = vpop.xlane.xlu1 %1467  ;;  %v1378_v2 = vpop.xlane.xlu0 %1377 }
 0x3ae   :  { %v1499_v15 = vmax.f32 %v1468_v18, 1e-24 }
 0x3b1   :  { %v1473_v29 = vpop.xlane.xlu1 %1472 }
 0x3b2   :  { %v1500_v44 = vmax.f32 %v1473_v29, 1e-24 }
 0x3b4   :  { %1872 = vrsqrt.f32 %v1500_v44 }
 0x3b5   :  { %v1478_v19 = vpop.xlane.xlu1 %1477  ;;  %1874 = vrsqrt.f32 %v1491_v51  ;;  %v1388_v13 = vpop.xlane.xlu0 %1387 }
 0x3b6   :  { %v1501_v62 = vmax.f32 %v1478_v19, 1e-24  ;;  %1876 = vrsqrt.f32 %v1499_v15 }
 0x3b8   :  { %1878 = vrsqrt.f32 %v1501_v62 }
 0x3b9   :  { %1880 = vrsqrt.f32 %v1489_v1  ;;  %v1483_v54 = vpop.xlane.xlu1 %1482 }
 0x3ba   :  { %v1502_v60 = vmax.f32 %v1483_v54, 1e-24  ;;  %1882 = vrsqrt.f32 %v1492_v55 }
 0x3bc   :  { %1884 = vrsqrt.f32 %v1502_v60  ;;  %v1398_v7 = vpop.xlane.xlu0 %1397 }
 0x3bd   :  { %v1488_v58 = vpop.xlane.xlu1 %1487  ;;  %1886 = vrsqrt.f32 %v1493_v43 }
 0x3be   :  { %v1503_v39 = vmax.f32 %v1488_v58, 1e-24 }
 0x3c0   :  { %1888 = vrsqrt.f32 %v1503_v39 }
 0x3c1   :  { %v1873_v0 = vpop.eup %1872  ;;  %v1383_v12 = vpop.xlane.xlu1 %1382 }
 0x3c2   :  { %v1875_v52 = vpop.eup %1874  ;;  %v1510_v33 = vmul.f32 %v1873_v0, %v1871_v53 }
 0x3c3   :  { %v1877_v61 = vpop.eup %1876 }
 0x3c4   :  { %v1515_v47 = vmul.f32 %v1510_v33, %v1383_v12 }
 0x3c5   :  { %v1879_v32 = vpop.eup %1878  ;;  %v1393_v22 = vpop.xlane.xlu1 %1392 }
 0x3c6   :  { %v1881_v3 = vpop.eup %1880  ;;  %v1511_v9 = vmul.f32 %v1879_v32, %v1875_v52  ;;  %v1534_v34 = vrot.slane %v1515_v47, %v1533_v30 }
 0x3c7   :  { %v1509_v4 = vmul.f32 %v1881_v3, %v1877_v61  ;;  %v1883_v57 = vpop.eup %1882 }
 0x3c8   :  { %v1516_v48 = vmul.f32 %v1511_v9, %v1388_v13 }
 0x3c9   :  { %v1885_v49 = vpop.eup %1884  ;;  %v1514_v17 = vmul.f32 %v1509_v4, %v1378_v2 }
 0x3ca   :  { %v1512_v50 = vmul.f32 %v1885_v49, %v1883_v57  ;;  %v1887_v21 = vpop.eup %1886  ;;  %v1541_v24 = vrot.slane %v1516_v48, %v1540_v14 }
 0x3cb   :  { %v1529_v38 = vrot.slane %v1514_v17, %v1528_v6 }
 0x3cc   :  { %v1517_v11 = vmul.f32 %v1512_v50, %v1393_v22 }
 0x3cd   :  { %v1889_v31 = vpop.eup %1888  ;;  %v1536_v27 = vsel %vm1535_vm0, %v1534_v34, %v1529_v38 }
 0x3ce   :  { %v1513_v25 = vmul.f32 %v1889_v31, %v1887_v21  ;;  %v1548_v26 = vrot.slane %v1517_v11, %v1547_v20  ;;  %v1543_v8 = vsel %vm1542_vm1, %v1541_v24, %v1536_v27 }
 0x3d0   :  { %v1518_v41 = vmul.f32 %v1513_v25, %v1398_v7  ;;  %v1550_v36 = vsel %vm1549_vm2, %v1548_v26, %v1543_v8 }
 0x3d2   :  { %v1555_v35 = vrot.slane %v1518_v41, %v1554_v5 }
 0x3d4   :  { %v1557_v40 = vsel %vm1556_vm3, %v1555_v35, %v1550_v36 }
 0x3d5   :  { %1560 = vst.msk [vmem:[#allocation10] sm:$0x1] %vm1559_vm4, %v1557_v40 }
 0x3d6   :  { %1981 = shalt.err (!%p1978_p10)
}
 0x3d7   :  { %1570 = dma.vmem_to_hbm [thread:$0]  %s1568_s22, 16, %s2744_s6, [#allocation4]  }
 0x3d8   :  { %1996 = dma.done.wait [#allocation4], 16  }
 0x3d9   :  { %1997 = vsyncadd [#allocation4], 4294967280 }
 0x3da   :  { %1574 = vsyncpa [#allocation3], 1 }
 0x3db   :  { %1575 = vsyncpa [#allocation6], 1 }
 0x3dc   :  { %1576 = vsyncpa [#allocation9], 1 }
 0x3dd   :  { %1577 = vsyncpa [#allocation4], 1 }

</bundles_post_ra>
